<compile_context>
chip_gen: v5e
topology: v5e:2x2
jax: 0.10.0
libtpu: 0.0.40
codegen_flags: <defaults>
</compile_context>

<pallas_src>
import jax
import jax.numpy as jnp
from jax.experimental import pallas as pl
from jax.experimental.pallas import tpu as pltpu


def _round_up(x, m):
    return ((x + m - 1) // m) * m


def _cdiv(a, b):
    return -(-a // b)


def _fused_mlp_kernel(x_ref, w1_ref, b1_ref, w2_ref, b2_ref,
                      w3_ref, b3_ref, w4_ref, b4_ref, o_ref):
    """Whole MLP for one batch row-tile. Intermediates never touch HBM."""
    mxu_dtype = w1_ref.dtype  # bf16 MXU inputs; f32 accumulation + epilogue.

    h = jnp.dot(x_ref[...], w1_ref[...], preferred_element_type=jnp.float32)
    h = jnp.maximum(h + b1_ref[...], 0.0).astype(mxu_dtype)

    h = jnp.dot(h, w2_ref[...], preferred_element_type=jnp.float32)
    h = jnp.maximum(h + b2_ref[...], 0.0).astype(mxu_dtype)

    h = jnp.dot(h, w3_ref[...], preferred_element_type=jnp.float32)
    h = jnp.maximum(h + b3_ref[...], 0.0).astype(mxu_dtype)

    y = jnp.dot(h, w4_ref[...], preferred_element_type=jnp.float32) + b4_ref[...]
    o_ref[...] = y.astype(o_ref.dtype)


def prepare_mlp_params(params, compute_dtype=jnp.bfloat16):
    """One-time parameter prep (hoisted out of the hot path).

    * Weights cast to the MXU compute dtype (bf16).
    * Biases reshaped to (1, n) and kept f32 (f32 epilogue).
    * Last-layer W/b zero-padded along the output dim up to a multiple of 128
      so the kernel's output slab is lane-dense (unmasked vector stores).
    """
    (w1, b1), (w2, b2), (w3, b3), (w4, b4) = params
    out_dim = int(w4.shape[1])
    out_pad = _round_up(out_dim, 128)
    if out_pad != out_dim:
        w4 = jnp.pad(w4, ((0, 0), (0, out_pad - out_dim)))
        b4 = jnp.pad(b4, (0, out_pad - out_dim))

    weights = tuple(w.astype(compute_dtype) for w in (w1, w2, w3, w4))
    biases = tuple(b.reshape(1, -1).astype(jnp.float32)
                   for b in (b1, b2, b3, b4))
    return {
        "weights": weights,
        "biases": biases,
        "out_dim": out_dim,
        "compute_dtype": compute_dtype,
    }


def mlp_forward(x, prepared, *, max_tile_m=1024):
    """Fused Pallas forward pass, equivalent to MLP.forward."""
    w1c, w2c, w3c, w4c = prepared["weights"]
    b1r, b2r, b3r, b4r = prepared["biases"]
    out_dim = prepared["out_dim"]
    compute_dtype = prepared["compute_dtype"]

    batch, in_dim = x.shape
    h1, h2, h3 = w1c.shape[1], w2c.shape[1], w3c.shape[1]
    out_pad = w4c.shape[1]

    # ---- tiling -------------------------------------------------------------
    # Pad only to the 8-sublane granularity, then derive the tile size so that
    # (a) it never exceeds max_tile_m, (b) padding waste stays <= a few rows,
    # (c) batches >= 512 rows always produce >= 2 grid steps (v7x has 2 TCs).
    padded8 = max(8, _round_up(batch, 8))
    num_tiles = _cdiv(padded8, max_tile_m)
    if num_tiles == 1 and padded8 >= 512:
        num_tiles = 2
    tile_m = _round_up(_cdiv(padded8, num_tiles), 8)
    padded = tile_m * num_tiles
    if padded != batch:
        x = jnp.pad(x, ((0, padded - batch), (0, 0)))

    xc = x.astype(compute_dtype)

    grid = (num_tiles,)
    resident = lambda i: (0, 0)  # constant block index -> stays in VMEM

    flops = 2 * padded * (in_dim * h1 + h1 * h2 + h2 * h3 + h3 * out_pad)
    bytes_accessed = (
        xc.size * xc.dtype.itemsize
        + sum(int(w.size) * w.dtype.itemsize for w in (w1c, w2c, w3c, w4c))
        + sum(int(b.size) * b.dtype.itemsize for b in (b1r, b2r, b3r, b4r))
        + padded * out_pad * 4
    )

    out = pl.pallas_call(
        _fused_mlp_kernel,
        out_shape=jax.ShapeDtypeStruct((padded, out_pad), jnp.float32),
        grid=grid,
        in_specs=[
            pl.BlockSpec((tile_m, in_dim), lambda i: (i, 0)),
            pl.BlockSpec((in_dim, h1), resident),
            pl.BlockSpec((1, h1), resident),
            pl.BlockSpec((h1, h2), resident),
            pl.BlockSpec((1, h2), resident),
            pl.BlockSpec((h2, h3), resident),
            pl.BlockSpec((1, h3), resident),
            pl.BlockSpec((h3, out_pad), resident),
            pl.BlockSpec((1, out_pad), resident),
        ],
        out_specs=pl.BlockSpec((tile_m, out_pad), lambda i: (i, 0)),
        compiler_params=pltpu.CompilerParams(
            dimension_semantics=("parallel",),
            vmem_limit_bytes=32 * 1024 * 1024),
        cost_estimate=pl.CostEstimate(
            flops=int(flops), transcendentals=0,
            bytes_accessed=int(bytes_accessed)),
    )(xc, w1c, b1r, w2c, b2r, w3c, b3r, w4c, b4r)

    return out[:batch, :out_dim]


def init_mlp_params(key, in_dim, out_dim, layers=(512, 512, 512)):
    """Deterministic parameter init mirroring the nn.Linear shapes."""
    dims = [in_dim] + list(layers) + [out_dim]
    params = []
    for li in range(len(dims) - 1):
        key, kw, kb = jax.random.split(key, 3)
        fan_in, fan_out = dims[li], dims[li + 1]
        bound = 1.0 / jnp.sqrt(fan_in)
        # stored as [in, out] (transposed vs torch's [out, in])
        w = jax.random.uniform(kw, (fan_in, fan_out), jnp.float32, -bound, bound)
        b = jax.random.uniform(kb, (fan_out,), jnp.float32, -bound, bound)
        params.append((w, b))
    return params


if __name__ == "__main__":
    key = jax.random.PRNGKey(0)
    key, kx = jax.random.split(key)

    batch, in_dim, out_dim = 8, 32, 16
    layers = (512, 512, 512)   # same hidden widths as the PyTorch default

    x = jax.random.normal(kx, (batch, in_dim), jnp.float32)
    params = init_mlp_params(key, in_dim, out_dim, layers)

    # One-time prep (bf16 weights, f32 biases, lane-dense padded last layer).
    prepared = prepare_mlp_params(params)

    out = mlp_forward(x, prepared)
    out = jax.block_until_ready(out)

    # Sanity check against plain f32 JAX reference. Tolerance is loosened to
    # 2e-2 because the kernel uses bf16 MXU inputs (f32 accumulation).
    ref = x
    for idx, (w, b) in enumerate(params):
        ref = ref @ w + b
        if idx < len(params) - 1:
            ref = jnp.maximum(ref, 0.0)

    assert out.shape == (batch, out_dim)
    assert jnp.allclose(out, ref, atol=2e-2, rtol=2e-2), (
        f"max abs err = {jnp.max(jnp.abs(out - ref))}")

    print("KERNEL_OK")
</pallas_src>

<mosaic_0001>
module attributes {stable_mosaic.version = 11 : i64} {
  func.func @_fused_mlp_kernel(%arg0: i32, %arg1: memref<8x32xbf16, #tpu.memory_space<vmem>>, %arg2: memref<32x512xbf16, #tpu.memory_space<vmem>>, %arg3: memref<1x512xf32, #tpu.memory_space<vmem>>, %arg4: memref<512x512xbf16, #tpu.memory_space<vmem>>, %arg5: memref<1x512xf32, #tpu.memory_space<vmem>>, %arg6: memref<512x512xbf16, #tpu.memory_space<vmem>>, %arg7: memref<1x512xf32, #tpu.memory_space<vmem>>, %arg8: memref<512x128xbf16, #tpu.memory_space<vmem>>, %arg9: memref<1x128xf32, #tpu.memory_space<vmem>>, %arg10: memref<8x128xf32, #tpu.memory_space<vmem>>) attributes {dimension_semantics = [#tpu.dimension_semantics<parallel>], iteration_bounds = array<i64: 1>, scalar_prefetch = 0 : i64, scratch_operands = 0 : i64, tpu.core_type = #tpu.core_type<tc>, window_params = [{transform_indices = @transform_0, window_bounds = array<i64: 8, 32>}, {pipeline_mode = #tpu.pipeline_mode<synchronous>, transform_indices = @transform_1, window_bounds = array<i64: 32, 512>}, {pipeline_mode = #tpu.pipeline_mode<synchronous>, transform_indices = @transform_2, window_bounds = array<i64: 1, 512>}, {pipeline_mode = #tpu.pipeline_mode<synchronous>, transform_indices = @transform_3, window_bounds = array<i64: 512, 512>}, {pipeline_mode = #tpu.pipeline_mode<synchronous>, transform_indices = @transform_4, window_bounds = array<i64: 1, 512>}, {pipeline_mode = #tpu.pipeline_mode<synchronous>, transform_indices = @transform_5, window_bounds = array<i64: 512, 512>}, {pipeline_mode = #tpu.pipeline_mode<synchronous>, transform_indices = @transform_6, window_bounds = array<i64: 1, 512>}, {pipeline_mode = #tpu.pipeline_mode<synchronous>, transform_indices = @transform_7, window_bounds = array<i64: 512, 128>}, {pipeline_mode = #tpu.pipeline_mode<synchronous>, transform_indices = @transform_8, window_bounds = array<i64: 1, 128>}, {transform_indices = @transform_9, window_bounds = array<i64: 8, 128>}]} {
    %c0 = arith.constant 0 : index
    %c0_0 = arith.constant 0 : index
    %0 = vector.load %arg1[%c0, %c0_0] : memref<8x32xbf16, #tpu.memory_space<vmem>>, vector<8x32xbf16>
    %c0_1 = arith.constant 0 : index
    %c0_2 = arith.constant 0 : index
    %1 = vector.load %arg2[%c0_1, %c0_2] : memref<32x512xbf16, #tpu.memory_space<vmem>>, vector<32x512xbf16>
    %cst = arith.constant dense<0.000000e+00> : vector<8x512xf32>
    %2 = tpu.matmul %0, %1, %cst {dimension_numbers = #tpu.dot_dimension_numbers<[1], [0], [0], [1], [0, 0, 1, 1], [], []>} : vector<8x32xbf16>, vector<32x512xbf16>, vector<8x512xf32> -> vector<8x512xf32>
    %c0_3 = arith.constant 0 : index
    %c0_4 = arith.constant 0 : index
    %3 = vector.load %arg3[%c0_3, %c0_4] : memref<1x512xf32, #tpu.memory_space<vmem>>, vector<1x512xf32>
    %4 = vector.broadcast %3 : vector<1x512xf32> to vector<8x512xf32>
    %5 = arith.addf %2, %4 : vector<8x512xf32>
    %cst_5 = arith.constant 0.000000e+00 : f32
    %6 = vector.broadcast %cst_5 : f32 to vector<8x512xf32>
    %7 = arith.maximumf %5, %6 : vector<8x512xf32>
    %8 = arith.truncf %7 : vector<8x512xf32> to vector<8x512xbf16>
    %c0_6 = arith.constant 0 : index
    %c0_7 = arith.constant 0 : index
    %9 = vector.load %arg4[%c0_6, %c0_7] : memref<512x512xbf16, #tpu.memory_space<vmem>>, vector<512x512xbf16>
    %cst_8 = arith.constant dense<0.000000e+00> : vector<8x512xf32>
    %10 = tpu.matmul %8, %9, %cst_8 {dimension_numbers = #tpu.dot_dimension_numbers<[1], [0], [0], [1], [0, 0, 1, 1], [], []>} : vector<8x512xbf16>, vector<512x512xbf16>, vector<8x512xf32> -> vector<8x512xf32>
    %c0_9 = arith.constant 0 : index
    %c0_10 = arith.constant 0 : index
    %11 = vector.load %arg5[%c0_9, %c0_10] : memref<1x512xf32, #tpu.memory_space<vmem>>, vector<1x512xf32>
    %12 = vector.broadcast %11 : vector<1x512xf32> to vector<8x512xf32>
    %13 = arith.addf %10, %12 : vector<8x512xf32>
    %cst_11 = arith.constant 0.000000e+00 : f32
    %14 = vector.broadcast %cst_11 : f32 to vector<8x512xf32>
    %15 = arith.maximumf %13, %14 : vector<8x512xf32>
    %16 = arith.truncf %15 : vector<8x512xf32> to vector<8x512xbf16>
    %c0_12 = arith.constant 0 : index
    %c0_13 = arith.constant 0 : index
    %17 = vector.load %arg6[%c0_12, %c0_13] : memref<512x512xbf16, #tpu.memory_space<vmem>>, vector<512x512xbf16>
    %cst_14 = arith.constant dense<0.000000e+00> : vector<8x512xf32>
    %18 = tpu.matmul %16, %17, %cst_14 {dimension_numbers = #tpu.dot_dimension_numbers<[1], [0], [0], [1], [0, 0, 1, 1], [], []>} : vector<8x512xbf16>, vector<512x512xbf16>, vector<8x512xf32> -> vector<8x512xf32>
    %c0_15 = arith.constant 0 : index
    %c0_16 = arith.constant 0 : index
    %19 = vector.load %arg7[%c0_15, %c0_16] : memref<1x512xf32, #tpu.memory_space<vmem>>, vector<1x512xf32>
    %20 = vector.broadcast %19 : vector<1x512xf32> to vector<8x512xf32>
    %21 = arith.addf %18, %20 : vector<8x512xf32>
    %cst_17 = arith.constant 0.000000e+00 : f32
    %22 = vector.broadcast %cst_17 : f32 to vector<8x512xf32>
    %23 = arith.maximumf %21, %22 : vector<8x512xf32>
    %24 = arith.truncf %23 : vector<8x512xf32> to vector<8x512xbf16>
    %c0_18 = arith.constant 0 : index
    %c0_19 = arith.constant 0 : index
    %25 = vector.load %arg8[%c0_18, %c0_19] : memref<512x128xbf16, #tpu.memory_space<vmem>>, vector<512x128xbf16>
    %cst_20 = arith.constant dense<0.000000e+00> : vector<8x128xf32>
    %26 = tpu.matmul %24, %25, %cst_20 {dimension_numbers = #tpu.dot_dimension_numbers<[1], [0], [0], [1], [0, 0, 1, 1], [], []>} : vector<8x512xbf16>, vector<512x128xbf16>, vector<8x128xf32> -> vector<8x128xf32>
    %c0_21 = arith.constant 0 : index
    %c0_22 = arith.constant 0 : index
    %27 = vector.load %arg9[%c0_21, %c0_22] : memref<1x128xf32, #tpu.memory_space<vmem>>, vector<1x128xf32>
    %28 = vector.broadcast %27 : vector<1x128xf32> to vector<8x128xf32>
    %29 = arith.addf %26, %28 : vector<8x128xf32>
    %c0_23 = arith.constant 0 : index
    %c0_24 = arith.constant 0 : index
    %30 = vector.load %arg10[%c0_23, %c0_24] : memref<8x128xf32, #tpu.memory_space<vmem>>, vector<8x128xf32>
    tpu.vector_store %arg10[%c0_23, %c0_24], %29 {strides = array<i32>} : memref<8x128xf32, #tpu.memory_space<vmem>>, vector<8x128xf32>,
    return
  }
  func.func @transform_0(%arg0: i32) -> (i32, i32) {
    %c0_i32 = arith.constant 0 : i32
    %c0_i32_0 = arith.constant 0 : i32
    return %arg0, %c0_i32 : i32, i32
  }
  func.func @transform_1(%arg0: i32) -> (i32, i32) {
    %c0_i32 = arith.constant 0 : i32
    %c0_i32_0 = arith.constant 0 : i32
    %c0_i32_1 = arith.constant 0 : i32
    return %c0_i32, %c0_i32_0 : i32, i32
  }
  func.func @transform_2(%arg0: i32) -> (i32, i32) {
    %c0_i32 = arith.constant 0 : i32
    %c0_i32_0 = arith.constant 0 : i32
    %c0_i32_1 = arith.constant 0 : i32
    return %c0_i32, %c0_i32_0 : i32, i32
  }
  func.func @transform_3(%arg0: i32) -> (i32, i32) {
    %c0_i32 = arith.constant 0 : i32
    %c0_i32_0 = arith.constant 0 : i32
    %c0_i32_1 = arith.constant 0 : i32
    return %c0_i32, %c0_i32_0 : i32, i32
  }
  func.func @transform_4(%arg0: i32) -> (i32, i32) {
    %c0_i32 = arith.constant 0 : i32
    %c0_i32_0 = arith.constant 0 : i32
    %c0_i32_1 = arith.constant 0 : i32
    return %c0_i32, %c0_i32_0 : i32, i32
  }
  func.func @transform_5(%arg0: i32) -> (i32, i32) {
    %c0_i32 = arith.constant 0 : i32
    %c0_i32_0 = arith.constant 0 : i32
    %c0_i32_1 = arith.constant 0 : i32
    return %c0_i32, %c0_i32_0 : i32, i32
  }
  func.func @transform_6(%arg0: i32) -> (i32, i32) {
    %c0_i32 = arith.constant 0 : i32
    %c0_i32_0 = arith.constant 0 : i32
    %c0_i32_1 = arith.constant 0 : i32
    return %c0_i32, %c0_i32_0 : i32, i32
  }
  func.func @transform_7(%arg0: i32) -> (i32, i32) {
    %c0_i32 = arith.constant 0 : i32
    %c0_i32_0 = arith.constant 0 : i32
    %c0_i32_1 = arith.constant 0 : i32
    return %c0_i32, %c0_i32_0 : i32, i32
  }
  func.func @transform_8(%arg0: i32) -> (i32, i32) {
    %c0_i32 = arith.constant 0 : i32
    %c0_i32_0 = arith.constant 0 : i32
    %c0_i32_1 = arith.constant 0 : i32
    return %c0_i32, %c0_i32_0 : i32, i32
  }
  func.func @transform_9(%arg0: i32) -> (i32, i32) {
    %c0_i32 = arith.constant 0 : i32
    %c0_i32_0 = arith.constant 0 : i32
    return %arg0, %c0_i32 : i32, i32
  }
}

</mosaic_0001>

<bundles_post_ra>
// kernel: tpu_custom_call.1
= control target key start
LH: loop header
LB: loop body
LE: loop exit
PB: predicated region body
PF: predicated region fallthrough
CT: control target
= control target key end

     0   :  { %14 = vsyncpa [#allocation3], 0  ;;  %s4448_s0 = inlined_call_operand.hbm [shape: bf16[8,32], index: 0, kind: input, shape index: {}]   ;;  %s4449_s1 = inlined_call_operand.hbm [shape: bf16[32,512], index: 1, kind: input, shape index: {}]   ;;  %s4450_s2 = inlined_call_operand.hbm [shape: f32[1,512], index: 2, kind: input, shape index: {}]   ;;  %s4451_s3 = inlined_call_operand.hbm [shape: bf16[512,512], index: 3, kind: input, shape index: {}]   ;;  %s4452_s4 = inlined_call_operand.hbm [shape: f32[1,512], index: 4, kind: input, shape index: {}]   ;;  %s4453_s5 = inlined_call_operand.hbm [shape: bf16[512,512], index: 5, kind: input, shape index: {}]   ;;  %s4454_s6 = inlined_call_operand.vmem [shape: f32[1,512], index: 6, kind: input, shape index: {}]   ;;  %s4455_s7 = inlined_call_operand.hbm [shape: bf16[512,128], index: 7, kind: input, shape index: {}]   ;;  %s4456_s8 = inlined_call_operand.vmem [shape: f32[1,128], index: 8, kind: input, shape index: {}]   ;;  %s4457_s9 = inlined_call_operand.hbm [shape: f32[8,128], index: 9, kind: output, shape index: {}]  }
   0x1   :  { %15 = vsyncpa [#allocation6], 0 }
   0x2   :  { %16 = vsyncpa [#allocation9], 0 }
   0x3   :  { %17 = vsyncpa [#allocation12], 0  ;;  %s34_s11 = sshll.u32 %s4449_s1, 4  ;;  %s35_s11 = int_to_ptr.hbm [resolvable:$true] %s34_s11 }
   0x4   :  { %18 = vsyncpa [#allocation4], 0  ;;  %s4280_s12 = smov [#allocation5]   ;;  %s58_s16 = sshll.u32 %s4451_s3, 4  ;;  %s59_s16 = int_to_ptr.hbm [resolvable:$true] %s58_s16 }
   0x5   :  { %s36_s13 = sshll.u32 %s4280_s12, 4  ;;  %s4281_s17 = smov 256   ;;  %s37_s13 = int_to_ptr.vmem [resolvable:$true] %s36_s13 }
   0x6   :  { %s4282_s18 = smov 16   ;;  %s4283_s19 = smov [#allocation8]  }
   0x7   :  { %42 = dma.hbm_to_vmem [thread:$0]  %s35_s11, 1024, %s37_s13, [#allocation6], %s4281_s17, %s4281_s17, %s4282_s18  }
   0x8   :  { %s60_s20 = sshll.u32 %s4283_s19, 4  ;;  %s82_s23 = sshll.u32 %s4453_s5, 4  ;;  %s61_s20 = int_to_ptr.vmem [resolvable:$true] %s60_s20  ;;  %s83_s23 = int_to_ptr.hbm [resolvable:$true] %s82_s23 }
   0x9   :  { %66 = dma.hbm_to_vmem [thread:$0]  %s59_s16, 16384, %s61_s20, [#allocation9], %s4281_s17, %s4281_s17, %s4282_s18  }
   0xa   :  { %s24_s25 = sshll.u32 %s4448_s0, 4  ;;  %s4284_s26 = smov [#allocation11]   ;;  %s25_s25 = int_to_ptr.hbm [resolvable:$true] %s24_s25 }
   0xb   :  { %s84_s27 = sshll.u32 %s4284_s26, 4  ;;  %s4285_s3 = smov [#allocation2]   ;;  %s85_s27 = int_to_ptr.vmem [resolvable:$true] %s84_s27 }
   0xc   :  { %90 = dma.hbm_to_vmem [thread:$0]  %s83_s23, 16384, %s85_s27, [#allocation12], %s4281_s17, %s4281_s17, %s4282_s18  }
   0xd   :  { %s26_s28 = sshll.u32 %s4285_s3, 4  ;;  %s48_s10 = sshll.u32 %s4450_s2, 4  ;;  %s27_s28 = int_to_ptr.vmem [resolvable:$true] %s26_s28  ;;  %s49_s10 = int_to_ptr.hbm [resolvable:$true] %s48_s10 }
   0xe   :  { %29 = dma.hbm_to_vmem [thread:$0]  %s25_s25, 64, %s27_s28, [#allocation3]  }
   0xf   :  { %s72_s12 = sshll.u32 %s4452_s4, 4  ;;  %s4286_s13 = smov [#allocation7]   ;;  %s73_s12 = int_to_ptr.hbm [resolvable:$true] %s72_s12 }
  0x10   :  { %s50_s0 = sshll.u32 %s4286_s13, 4  ;;  %s4287_s14 = smov [#allocation10]   ;;  %s51_s0 = int_to_ptr.vmem [resolvable:$true] %s50_s0 }
  0x11   :  { %53 = dma.hbm_to_vmem [thread:$0]  %s49_s10, 64, %s51_s0, [#allocation6]  }
  0x12   :  { %s74_s15 = sshll.u32 %s4287_s14, 4  ;;  %s97_s18 = sshll.u32 %s4455_s7, 4  ;;  %s75_s15 = int_to_ptr.vmem [resolvable:$true] %s74_s15  ;;  %s98_s18 = int_to_ptr.hbm [resolvable:$true] %s97_s18 }
  0x13   :  { %77 = dma.hbm_to_vmem [thread:$0]  %s73_s12, 64, %s75_s15, [#allocation9]  }
  0x14   :  { %s4288_s2 = smov [#allocation13]   ;;  %s4289_s20 = smov 64  }
  0x15   :  { %s99_s19 = sshll.u32 %s4288_s2, 4  ;;  %s4290_s21 = smov 4   ;;  %s100_s19 = int_to_ptr.vmem [resolvable:$true] %s99_s19 }
  0x16   :  { %105 = dma.hbm_to_vmem [thread:$0]  %s98_s18, 4096, %s100_s19, [#allocation12], %s4289_s20, %s4289_s20, %s4290_s21  }
  0x17   :  { %4270 = dma.done.wait [#allocation3], 64  }
  0x18   :  { %4271 = vsyncadd [#allocation3], 4294967232 }
  0x19   :  { %4272 = dma.done.wait [#allocation6], 1088  }
  0x1a   :  { %4273 = vsyncadd [#allocation6], 4294966208 }
  0x1b   :  { %4274 = dma.done.wait [#allocation9], 16448  }
  0x1c   :  { %4275 = vsyncadd [#allocation9], 4294950848 }
  0x1d   :  { %4276 = dma.done.wait [#allocation12], 20480  }
  0x1e   :  { %4277 = vsyncadd [#allocation12], 4294946816  ;;  %vm196_vm0 = vcmask 261120   ;;  %v2599_v0 = vld [vmem:[#allocation5 + $0x20] sm:$0xf]  ;;  %s4291_s23 = smov [#allocation14]  }
  0x1f   :  { %v3775_v1 = vld [vmem:[#allocation5 + $0x2c] sm:$0xf0]  ;;  %v3773_v2 = vld [vmem:[#allocation5 + $0x24] sm:$0xf]  ;;  %v2601_v4 = vld [vmem:[#allocation5 + $0x30] sm:$0xf0] }
  0x20   :  { %v2600_v3 = vor.u32 %v3775_v1, %v2599_v0  ;;  %v2607_v5 = vld [vmem:[#allocation5 + $0x28] sm:$0xf]  ;;  %v3776_v6 = vld [vmem:[#allocation5 + $0x34] sm:$0xf0]  ;;  %v2604_v7 = vor.u32 %v3773_v2, %v2601_v4  ;;  %v3774_v9 = vld [vmem:[#allocation5 + $0x2c] sm:$0xf] }
  0x21   :  { %v2608_v8 = vor.u32 %v3776_v6, %v2607_v5  ;;  %v2609_v10 = vld [vmem:[#allocation5 + $0x38] sm:$0xf0]  ;;  %v2583_v11 = vld [vmem:[#allocation5] sm:$0xf]  ;;  %v3771_v13 = vld [vmem:[#allocation5 + $0xc] sm:$0xf0] }
  0x22   :  { %206 = vmatpush.bf16.msra.mxu0 %v2600_v3  ;;  %v2612_v12 = vor.u32 %v3774_v9, %v2609_v10  ;;  %v3769_v14 = vld [vmem:[#allocation5 + $0x4] sm:$0xf]  ;;  %v2585_v15 = vld [vmem:[#allocation5 + $0x10] sm:$0xf0]  ;;  %219 = vmatpush.bf16.msra.mxu1 %v2604_v7  ;;  %v2584_v16 = vor.u32 %v3771_v13, %v2583_v11  ;;  %v2591_v18 = vld [vmem:[#allocation5 + $0x8] sm:$0xf] }
  0x23   :  { %232 = vmatpush.bf16.msra.mxu2 %v2608_v8  ;;  %v2588_v17 = vor.u32 %v3769_v14, %v2585_v15  ;;  %v3772_v19 = vld [vmem:[#allocation5 + $0x14] sm:$0xf0]  ;;  %v3770_v20 = vld [vmem:[#allocation5 + $0xc] sm:$0xf]  ;;  %v2593_v22 = vld [vmem:[#allocation5 + $0x18] sm:$0xf0] }
  0x24   :  { %245 = vmatpush.bf16.msra.mxu3 %v2612_v12  ;;  %v2592_v21 = vor.u32 %v3772_v19, %v2591_v18  ;;  %v137_v23 = vld [vmem:[#allocation2] sm:$0xf]  ;;  %v2731_v24 = vld [vmem:[#allocation8 + $0xe0] sm:$0xf]  ;;  %v2596_v25 = vor.u32 %v3770_v20, %v2593_v22  ;;  %v3807_v26 = vld [vmem:[#allocation8 + $0xec] sm:$0xf0] }
  0x25   :  { %v2859_v27 = vld [vmem:[#allocation8 + $0x1e0] sm:$0xf]  ;;  %v3839_v28 = vld [vmem:[#allocation8 + $0x1ec] sm:$0xf0]  ;;  %v2732_v29 = vor.u32 %v3807_v26, %v2731_v24  ;;  %s2566_s1 = sshll.u32 %s4291_s23, 4  ;;  %s2568_s26 = sshll.u32 %s4457_s9, 4  ;;  %s2567_s1 = int_to_ptr.vmem [resolvable:$true] %s2566_s1  ;;  %s2569_s26 = int_to_ptr.hbm [resolvable:$true] %s2568_s26 }
  0x26   :  { %207 = vmatpush.bf16.msra.mxu0 %v2584_v16  ;;  %v2860_v30 = vor.u32 %v3839_v28, %v2859_v27  ;;  %v2715_v31 = vld [vmem:[#allocation8 + $0xc0] sm:$0xf]  ;;  %v3803_v32 = vld [vmem:[#allocation8 + $0xcc] sm:$0xf0]  ;;  %220 = vmatpush.bf16.msra.mxu1 %v2588_v17 }
  0x27   :  { %v2843_v33 = vld [vmem:[#allocation8 + $0x1c0] sm:$0xf]  ;;  %233 = vmatpush.bf16.msra.mxu2 %v2592_v21  ;;  %v3835_v34 = vld [vmem:[#allocation8 + $0x1cc] sm:$0xf0]  ;;  %v2716_v37 = vor.u32 %v3803_v32, %v2715_v31 }
  0x28   :  { %v2987_v35 = vld [vmem:[#allocation8 + $0x2e0] sm:$0xf]  ;;  %v3871_v36 = vld [vmem:[#allocation8 + $0x2ec] sm:$0xf0]  ;;  %246 = vmatpush.bf16.msra.mxu3 %v2596_v25  ;;  %v2844_v42 = vor.u32 %v3835_v34, %v2843_v33 }
  0x29   :  { %v2988_v38 = vor.u32 %v3871_v36, %v2987_v35  ;;  %v3115_v39 = vld [vmem:[#allocation8 + $0x3e0] sm:$0xf]  ;;  %v3903_v40 = vld [vmem:[#allocation8 + $0x3ec] sm:$0xf0]  ;;  %2613 = vmatmul.msk.bf16.vlgmr.msra.gmra.mxu0 %vm196_vm0, %v137_v23  ;;  %2614 = vmatmul.msk.bf16.vlgmr.msra.gmra.mxu1 %vm196_vm0, %v137_v23 }
  0x2a   :  { %1038 = vmatpush.bf16.msrb.mxu0 %v2732_v29  ;;  %v2699_v41 = vld [vmem:[#allocation8 + $0xa0] sm:$0xf]  ;;  %1051 = vmatpush.bf16.msrb.mxu1 %v2860_v30  ;;  %v3116_v43 = vor.u32 %v3903_v40, %v3115_v39  ;;  %v3799_v44 = vld [vmem:[#allocation8 + $0xac] sm:$0xf0] }
  0x2b   :  { %v2827_v45 = vld [vmem:[#allocation8 + $0x1a0] sm:$0xf]  ;;  %v3831_v46 = vld [vmem:[#allocation8 + $0x1ac] sm:$0xf0]  ;;  %2615 = vmatmul.msk.bf16.vlgmr.msra.gmra.mxu2 %vm196_vm0, %v137_v23  ;;  %2616 = vmatmul.msk.bf16.vlgmr.msra.gmra.mxu3 %vm196_vm0, %v137_v23  ;;  %v2700_v52 = vor.u32 %v3799_v44, %v2699_v41 }
  0x2c   :  { %v2971_v47 = vld [vmem:[#allocation8 + $0x2c0] sm:$0xf]  ;;  %v3867_v48 = vld [vmem:[#allocation8 + $0x2cc] sm:$0xf0]  ;;  %1064 = vmatpush.bf16.msrb.mxu2 %v2988_v38  ;;  %1077 = vmatpush.bf16.msrb.mxu3 %v3116_v43  ;;  %v2828_v57 = vor.u32 %v3831_v46, %v2827_v45 }
  0x2d   :  { %v3099_v49 = vld [vmem:[#allocation8 + $0x3c0] sm:$0xf]  ;;  %v2972_v50 = vor.u32 %v3867_v48, %v2971_v47  ;;  %v3899_v51 = vld [vmem:[#allocation8 + $0x3cc] sm:$0xf0]  ;;  %v3805_v47 = vld [vmem:[#allocation8 + $0xe4] sm:$0xf] }
  0x2e   :  { %1039 = vmatpush.bf16.msrb.mxu0 %v2716_v37  ;;  %v3100_v53 = vor.u32 %v3899_v51, %v3099_v49  ;;  %v2683_v54 = vld [vmem:[#allocation8 + $0x80] sm:$0xf]  ;;  %v3795_v55 = vld [vmem:[#allocation8 + $0x8c] sm:$0xf0]  ;;  %1052 = vmatpush.bf16.msrb.mxu1 %v2844_v42  ;;  %v2733_v48 = vld [vmem:[#allocation8 + $0xf0] sm:$0xf0] }
  0x2f   :  { %v2955_v56 = vld [vmem:[#allocation8 + $0x2a0] sm:$0xf]  ;;  %v3863_v58 = vld [vmem:[#allocation8 + $0x2ac] sm:$0xf0]  ;;  %v2684_v0 = vor.u32 %v3795_v55, %v2683_v54  ;;  %v3837_v49 = vld [vmem:[#allocation8 + $0x1e4] sm:$0xf] }
  0x30   :  { %v3083_v59 = vld [vmem:[#allocation8 + $0x3a0] sm:$0xf]  ;;  %v3895_v60 = vld [vmem:[#allocation8 + $0x3ac] sm:$0xf0]  ;;  %1065 = vmatpush.bf16.msrb.mxu2 %v2972_v50  ;;  %v2956_v63 = vor.u32 %v3863_v58, %v2955_v56  ;;  %1078 = vmatpush.bf16.msrb.mxu3 %v3100_v53  ;;  %v2861_v50 = vld [vmem:[#allocation8 + $0x1f0] sm:$0xf0] }
  0x31   :  { %v2811_v61 = vld [vmem:[#allocation8 + $0x180] sm:$0xf]  ;;  %v3827_v62 = vld [vmem:[#allocation8 + $0x18c] sm:$0xf0]  ;;  %v3084_v1 = vor.u32 %v3895_v60, %v3083_v59  ;;  %v3801_v54 = vld [vmem:[#allocation8 + $0xc4] sm:$0xf]  ;;  %v2736_v59 = vor.u32 %v3805_v47, %v2733_v48 }
  0x32   :  { %1040 = vmatpush.bf16.msrb.mxu0 %v2700_v52  ;;  %v2667_v2 = vld [vmem:[#allocation8 + $0x60] sm:$0xf]  ;;  %v3859_v4 = vld [vmem:[#allocation8 + $0x28c] sm:$0xf0]  ;;  %1053 = vmatpush.bf16.msrb.mxu1 %v2828_v57  ;;  %v2812_v5 = vor.u32 %v3827_v62, %v2811_v61  ;;  %v3869_v61 = vld [vmem:[#allocation8 + $0x2e4] sm:$0xf] }
  0x33   :  { %v2939_v3 = vld [vmem:[#allocation8 + $0x280] sm:$0xf]  ;;  %v3791_v6 = vld [vmem:[#allocation8 + $0x6c] sm:$0xf0]  ;;  %v2989_v62 = vld [vmem:[#allocation8 + $0x2f0] sm:$0xf0] }
  0x34   :  { %v3067_v7 = vld [vmem:[#allocation8 + $0x380] sm:$0xf]  ;;  %v3891_v8 = vld [vmem:[#allocation8 + $0x38c] sm:$0xf0]  ;;  %1066 = vmatpush.bf16.msrb.mxu2 %v2956_v63  ;;  %v2940_v11 = vor.u32 %v3859_v4, %v2939_v3  ;;  %1079 = vmatpush.bf16.msrb.mxu3 %v3084_v1  ;;  %v2668_v12 = vor.u32 %v3791_v6, %v2667_v2  ;;  %v2864_v63 = vor.u32 %v3837_v49, %v2861_v50  ;;  %v3901_v1 = vld [vmem:[#allocation8 + $0x3e4] sm:$0xf] }
  0x35   :  { %v2795_v9 = vld [vmem:[#allocation8 + $0x160] sm:$0xf]  ;;  %v3823_v10 = vld [vmem:[#allocation8 + $0x16c] sm:$0xf0]  ;;  %v3068_v13 = vor.u32 %v3891_v8, %v3067_v7  ;;  %v3117_v2 = vld [vmem:[#allocation8 + $0x3f0] sm:$0xf0]  ;;  %v2992_v7 = vor.u32 %v3869_v61, %v2989_v62 }
  0x36   :  { %1041 = vmatpush.bf16.msrb.mxu0 %v2684_v0  ;;  %v2651_v14 = vld [vmem:[#allocation8 + $0x40] sm:$0xf]  ;;  %v3855_v16 = vld [vmem:[#allocation8 + $0x26c] sm:$0xf0]  ;;  %1054 = vmatpush.bf16.msrb.mxu1 %v2812_v5  ;;  %v2796_v17 = vor.u32 %v3823_v10, %v2795_v9  ;;  %v2717_v0 = vld [vmem:[#allocation8 + $0xd0] sm:$0xf0]  ;;  %v3120_v9 = vor.u32 %v3901_v1, %v3117_v2 }
  0x37   :  { %v2923_v15 = vld [vmem:[#allocation8 + $0x260] sm:$0xf]  ;;  %v3787_v18 = vld [vmem:[#allocation8 + $0x4c] sm:$0xf0]  ;;  %v3833_v3 = vld [vmem:[#allocation8 + $0x1c4] sm:$0xf]  ;;  %v2720_v8 = vor.u32 %v3801_v54, %v2717_v0 }
  0x38   :  { %v3051_v19 = vld [vmem:[#allocation8 + $0x360] sm:$0xf]  ;;  %v3887_v20 = vld [vmem:[#allocation8 + $0x36c] sm:$0xf0]  ;;  %1067 = vmatpush.bf16.msrb.mxu2 %v2940_v11  ;;  %v2924_v23 = vor.u32 %v3855_v16, %v2923_v15  ;;  %1080 = vmatpush.bf16.msrb.mxu3 %v3068_v13  ;;  %v2652_v24 = vor.u32 %v3787_v18, %v2651_v14  ;;  %v2845_v4 = vld [vmem:[#allocation8 + $0x1d0] sm:$0xf0] }
  0x39   :  { %v2779_v21 = vld [vmem:[#allocation8 + $0x140] sm:$0xf]  ;;  %v3819_v22 = vld [vmem:[#allocation8 + $0x14c] sm:$0xf0]  ;;  %v3052_v25 = vor.u32 %v3887_v20, %v3051_v19  ;;  %v3797_v10 = vld [vmem:[#allocation8 + $0xa4] sm:$0xf]  ;;  %v2848_v13 = vor.u32 %v3833_v3, %v2845_v4 }
  0x3a   :  { %1042 = vmatpush.bf16.msrb.mxu0 %v2668_v12  ;;  %v2635_v26 = vld [vmem:[#allocation8 + $0x20] sm:$0xf]  ;;  %v3851_v28 = vld [vmem:[#allocation8 + $0x24c] sm:$0xf0]  ;;  %1055 = vmatpush.bf16.msrb.mxu1 %v2796_v17  ;;  %v2780_v29 = vor.u32 %v3819_v22, %v2779_v21  ;;  %v3865_v11 = vld [vmem:[#allocation8 + $0x2c4] sm:$0xf] }
  0x3b   :  { %v2907_v27 = vld [vmem:[#allocation8 + $0x240] sm:$0xf]  ;;  %v3783_v30 = vld [vmem:[#allocation8 + $0x2c] sm:$0xf0]  ;;  %v2973_v12 = vld [vmem:[#allocation8 + $0x2d0] sm:$0xf0] }
  0x3c   :  { %v3035_v31 = vld [vmem:[#allocation8 + $0x340] sm:$0xf]  ;;  %v3883_v32 = vld [vmem:[#allocation8 + $0x34c] sm:$0xf0]  ;;  %1068 = vmatpush.bf16.msrb.mxu2 %v2924_v23  ;;  %v2908_v35 = vor.u32 %v3851_v28, %v2907_v27  ;;  %1081 = vmatpush.bf16.msrb.mxu3 %v3052_v25  ;;  %v2636_v37 = vor.u32 %v3783_v30, %v2635_v26  ;;  %v2701_v14 = vld [vmem:[#allocation8 + $0xb0] sm:$0xf0]  ;;  %v2976_v19 = vor.u32 %v3865_v11, %v2973_v12 }
  0x3d   :  { %v2763_v33 = vld [vmem:[#allocation8 + $0x120] sm:$0xf]  ;;  %v3815_v34 = vld [vmem:[#allocation8 + $0x12c] sm:$0xf0]  ;;  %v3036_v38 = vor.u32 %v3883_v32, %v3035_v31  ;;  %v3897_v15 = vld [vmem:[#allocation8 + $0x3c4] sm:$0xf]  ;;  %v2704_v20 = vor.u32 %v3797_v10, %v2701_v14 }
  0x3e   :  { %v2619_v36 = vld [vmem:[#allocation8] sm:$0xf]  ;;  %1043 = vmatpush.bf16.msrb.mxu0 %v2652_v24  ;;  %v3779_v39 = vld [vmem:[#allocation8 + $0xc] sm:$0xf0]  ;;  %1056 = vmatpush.bf16.msrb.mxu1 %v2780_v29  ;;  %v2764_v42 = vor.u32 %v3815_v34, %v2763_v33  ;;  %v3101_v16 = vld [vmem:[#allocation8 + $0x3d0] sm:$0xf0] }
  0x3f   :  { %v2891_v40 = vld [vmem:[#allocation8 + $0x220] sm:$0xf]  ;;  %v3847_v41 = vld [vmem:[#allocation8 + $0x22c] sm:$0xf0]  ;;  %v2620_v52 = vor.u32 %v3779_v39, %v2619_v36  ;;  %v3829_v17 = vld [vmem:[#allocation8 + $0x1a4] sm:$0xf]  ;;  %v3104_v21 = vor.u32 %v3897_v15, %v3101_v16 }
  0x40   :  { %v2747_v43 = vld [vmem:[#allocation8 + $0x100] sm:$0xf]  ;;  %v3879_v45 = vld [vmem:[#allocation8 + $0x32c] sm:$0xf0]  ;;  %1069 = vmatpush.bf16.msrb.mxu2 %v2908_v35  ;;  %v2892_v51 = vor.u32 %v3847_v41, %v2891_v40  ;;  %1082 = vmatpush.bf16.msrb.mxu3 %v3036_v38  ;;  %v2829_v18 = vld [vmem:[#allocation8 + $0x1b0] sm:$0xf0] }
  0x41   :  { %v3019_v44 = vld [vmem:[#allocation8 + $0x320] sm:$0xf]  ;;  %v3811_v46 = vld [vmem:[#allocation8 + $0x10c] sm:$0xf0]  ;;  %v3793_v22 = vld [vmem:[#allocation8 + $0x84] sm:$0xf]  ;;  %v2832_v25 = vor.u32 %v3829_v17, %v2829_v18 }
  0x42   :  { %1044 = vmatpush.bf16.msrb.mxu0 %v2636_v37  ;;  %v3020_v53 = vor.u32 %v3879_v45, %v3019_v44  ;;  %v2875_v55 = vld [vmem:[#allocation8 + $0x200] sm:$0xf]  ;;  %v3843_v56 = vld [vmem:[#allocation8 + $0x20c] sm:$0xf0]  ;;  %1057 = vmatpush.bf16.msrb.mxu1 %v2764_v42  ;;  %v2748_v58 = vor.u32 %v3811_v46, %v2747_v43  ;;  %v3861_v23 = vld [vmem:[#allocation8 + $0x2a4] sm:$0xf] }
  0x43   :  { %v3003_v57 = vld [vmem:[#allocation8 + $0x300] sm:$0xf]  ;;  %v3875_v60 = vld [vmem:[#allocation8 + $0x30c] sm:$0xf0]  ;;  %v2876_v5 = vor.u32 %v3843_v56, %v2875_v55  ;;  %v2957_v24 = vld [vmem:[#allocation8 + $0x2b0] sm:$0xf0] }
  0x44   :  { %1070 = vmatpush.bf16.msrb.mxu2 %v2892_v51  ;;  %1083 = vmatpush.bf16.msrb.mxu3 %v3020_v53  ;;  %v3004_v6 = vor.u32 %v3875_v60, %v3003_v57  ;;  %v2685_v26 = vld [vmem:[#allocation8 + $0x90] sm:$0xf0]  ;;  %v3893_v27 = vld [vmem:[#allocation8 + $0x3a4] sm:$0xf]  ;;  %v2960_v31 = vor.u32 %v3861_v23, %v2957_v24 }
  0x45   :  { %v3085_v28 = vld [vmem:[#allocation8 + $0x3b0] sm:$0xf0]  ;;  %v3825_v29 = vld [vmem:[#allocation8 + $0x184] sm:$0xf]  ;;  %v2688_v32 = vor.u32 %v3793_v22, %v2685_v26 }
  0x46   :  { %1045 = vmatpush.bf16.msrb.mxu0 %v2620_v52  ;;  %1058 = vmatpush.bf16.msrb.mxu1 %v2748_v58  ;;  %v2813_v30 = vld [vmem:[#allocation8 + $0x190] sm:$0xf0]  ;;  %v3088_v33 = vor.u32 %v3893_v27, %v3085_v28  ;;  %v3789_v34 = vld [vmem:[#allocation8 + $0x64] sm:$0xf] }
  0x47   :  { %v3857_v35 = vld [vmem:[#allocation8 + $0x284] sm:$0xf]  ;;  %v2941_v36 = vld [vmem:[#allocation8 + $0x290] sm:$0xf0]  ;;  %v2816_v37 = vor.u32 %v3825_v29, %v2813_v30 }
  0x48   :  { %1071 = vmatpush.bf16.msrb.mxu2 %v2876_v5  ;;  %1084 = vmatpush.bf16.msrb.mxu3 %v3004_v6  ;;  %v2669_v38 = vld [vmem:[#allocation8 + $0x70] sm:$0xf0]  ;;  %v3889_v39 = vld [vmem:[#allocation8 + $0x384] sm:$0xf]  ;;  %v2944_v43 = vor.u32 %v3857_v35, %v2941_v36  ;;  %v3840_v35 = vld [vmem:[#allocation8 + $0x1f4] sm:$0xf0] }
  0x49   :  { %v3069_v40 = vld [vmem:[#allocation8 + $0x390] sm:$0xf0]  ;;  %v3821_v41 = vld [vmem:[#allocation8 + $0x164] sm:$0xf]  ;;  %v2672_v44 = vor.u32 %v3789_v34, %v2669_v38  ;;  %v2867_v34 = vld [vmem:[#allocation8 + $0x1e8] sm:$0xf] }
  0x4a   :  { %1090 = vmatpush.bf16.msra.mxu0 %v2736_v59  ;;  %1103 = vmatpush.bf16.msra.mxu1 %v2864_v63  ;;  %v2797_v42 = vld [vmem:[#allocation8 + $0x170] sm:$0xf0]  ;;  %v3072_v45 = vor.u32 %v3889_v39, %v3069_v40  ;;  %v3785_v47 = vld [vmem:[#allocation8 + $0x44] sm:$0xf] }
  0x4b   :  { %v2800_v46 = vor.u32 %v3821_v41, %v2797_v42  ;;  %v2653_v48 = vld [vmem:[#allocation8 + $0x50] sm:$0xf0]  ;;  %v3817_v49 = vld [vmem:[#allocation8 + $0x144] sm:$0xf]  ;;  %v2868_v42 = vor.u32 %v3840_v35, %v2867_v34 }
  0x4c   :  { %1116 = vmatpush.bf16.msra.mxu2 %v2992_v7  ;;  %1129 = vmatpush.bf16.msra.mxu3 %v3120_v9  ;;  %v2781_v50 = vld [vmem:[#allocation8 + $0x150] sm:$0xf0]  ;;  %v2656_v51 = vor.u32 %v3785_v47, %v2653_v48  ;;  %v3853_v53 = vld [vmem:[#allocation8 + $0x264] sm:$0xf]  ;;  %v3836_v47 = vld [vmem:[#allocation8 + $0x1d4] sm:$0xf0] }
  0x4d   :  { %v2784_v52 = vor.u32 %v3817_v49, %v2781_v50  ;;  %v2925_v54 = vld [vmem:[#allocation8 + $0x270] sm:$0xf0]  ;;  %v3885_v55 = vld [vmem:[#allocation8 + $0x364] sm:$0xf] }
  0x4e   :  { %1091 = vmatpush.bf16.msra.mxu0 %v2720_v8  ;;  %1104 = vmatpush.bf16.msra.mxu1 %v2848_v13  ;;  %v2928_v56 = vor.u32 %v3853_v53, %v2925_v54  ;;  %v3053_v57 = vld [vmem:[#allocation8 + $0x370] sm:$0xf0]  ;;  %v3781_v59 = vld [vmem:[#allocation8 + $0x24] sm:$0xf]  ;;  %v2995_v53 = vld [vmem:[#allocation8 + $0x2e8] sm:$0xf] }
  0x4f   :  { %v3056_v58 = vor.u32 %v3885_v55, %v3053_v57  ;;  %v2637_v60 = vld [vmem:[#allocation8 + $0x30] sm:$0xf0]  ;;  %v3813_v62 = vld [vmem:[#allocation8 + $0x124] sm:$0xf]  ;;  %v3872_v54 = vld [vmem:[#allocation8 + $0x2f4] sm:$0xf0] }
  0x50   :  { %1117 = vmatpush.bf16.msra.mxu2 %v2976_v19  ;;  %1130 = vmatpush.bf16.msra.mxu3 %v3104_v21  ;;  %v2640_v61 = vor.u32 %v3781_v59, %v2637_v60  ;;  %v2765_v63 = vld [vmem:[#allocation8 + $0x130] sm:$0xf0]  ;;  %v3849_v1 = vld [vmem:[#allocation8 + $0x244] sm:$0xf]  ;;  %v3123_v55 = vld [vmem:[#allocation8 + $0x3e8] sm:$0xf] }
  0x51   :  { %v2768_v0 = vor.u32 %v3813_v62, %v2765_v63  ;;  %v2909_v2 = vld [vmem:[#allocation8 + $0x250] sm:$0xf0]  ;;  %v3881_v3 = vld [vmem:[#allocation8 + $0x344] sm:$0xf]  ;;  %v3904_v59 = vld [vmem:[#allocation8 + $0x3f4] sm:$0xf0] }
  0x52   :  { %1092 = vmatpush.bf16.msra.mxu0 %v2704_v20  ;;  %1105 = vmatpush.bf16.msra.mxu1 %v2832_v25  ;;  %v2912_v4 = vor.u32 %v3849_v1, %v2909_v2  ;;  %v3037_v5 = vld [vmem:[#allocation8 + $0x350] sm:$0xf0]  ;;  %v3777_v7 = vld [vmem:[#allocation8 + $0x4] sm:$0xf]  ;;  %v146_v25 = vld [vmem:[#allocation7] sm:$0xf]  ;;  %v2996_v2 = vor.u32 %v3872_v54, %v2995_v53 }
  0x53   :  { %v3040_v6 = vor.u32 %v3881_v3, %v3037_v5  ;;  %v2621_v8 = vld [vmem:[#allocation8 + $0x10] sm:$0xf0]  ;;  %v3809_v9 = vld [vmem:[#allocation8 + $0x104] sm:$0xf]  ;;  %v148_v26 = vperm.slane %v146_v25, 0  ;;  %v149_v27 = vperm.slane %v146_v25, 1 }
  0x54   :  { %1118 = vmatpush.bf16.msra.mxu2 %v2960_v31  ;;  %1131 = vmatpush.bf16.msra.mxu3 %v3088_v33  ;;  %v2624_v10 = vor.u32 %v3777_v7, %v2621_v8  ;;  %v2749_v11 = vld [vmem:[#allocation8 + $0x110] sm:$0xf0]  ;;  %v3845_v13 = vld [vmem:[#allocation8 + $0x224] sm:$0xf]  ;;  %v2739_v31 = vld [vmem:[#allocation8 + $0xe8] sm:$0xf] }
  0x55   :  { %v2752_v12 = vor.u32 %v3809_v9, %v2749_v11  ;;  %v2893_v14 = vld [vmem:[#allocation8 + $0x230] sm:$0xf0]  ;;  %v3877_v16 = vld [vmem:[#allocation8 + $0x324] sm:$0xf]  ;;  %v150_v38 = vperm.slane %v146_v25, 2  ;;  %v151_v41 = vperm.slane %v146_v25, 3 }
  0x56   :  { %1093 = vmatpush.bf16.msra.mxu0 %v2688_v32  ;;  %1106 = vmatpush.bf16.msra.mxu1 %v2816_v37  ;;  %v2896_v15 = vor.u32 %v3845_v13, %v2893_v14  ;;  %v3021_v17 = vld [vmem:[#allocation8 + $0x330] sm:$0xf0]  ;;  %v3841_v19 = vld [vmem:[#allocation8 + $0x204] sm:$0xf]  ;;  %v3808_v32 = vld [vmem:[#allocation8 + $0xf4] sm:$0xf0] }
  0x57   :  { %v3024_v18 = vor.u32 %v3877_v16, %v3021_v17  ;;  %v2877_v20 = vld [vmem:[#allocation8 + $0x210] sm:$0xf0]  ;;  %v3873_v22 = vld [vmem:[#allocation8 + $0x304] sm:$0xf]  ;;  %v2740_v39 = vor.u32 %v3808_v32, %v2739_v31  ;;  %v2707_v60 = vld [vmem:[#allocation8 + $0xa8] sm:$0xf] }
  0x58   :  { %1119 = vmatpush.bf16.msra.mxu2 %v2944_v43  ;;  %1132 = vmatpush.bf16.msra.mxu3 %v3072_v45  ;;  %v2880_v21 = vor.u32 %v3841_v19, %v2877_v20  ;;  %v3005_v23 = vld [vmem:[#allocation8 + $0x310] sm:$0xf0]  ;;  %v2723_v43 = vld [vmem:[#allocation8 + $0xc8] sm:$0xf]  ;;  %v3868_v7 = vld [vmem:[#allocation8 + $0x2d4] sm:$0xf0] }
  0x59   :  { %v3008_v24 = vor.u32 %v3873_v22, %v3005_v23  ;;  %v2835_v63 = vld [vmem:[#allocation8 + $0x1a8] sm:$0xf]  ;;  %v3900_v11 = vld [vmem:[#allocation8 + $0x3d4] sm:$0xf0] }
  0x5a   :  { %1094 = vmatpush.bf16.msra.mxu0 %v2672_v44  ;;  %1107 = vmatpush.bf16.msra.mxu1 %v2800_v46  ;;  %v3804_v44 = vld [vmem:[#allocation8 + $0xd4] sm:$0xf0]  ;;  %v2851_v46 = vld [vmem:[#allocation8 + $0x1c8] sm:$0xf] }
  0x5b   :  { %v3107_v8 = vld [vmem:[#allocation8 + $0x3c8] sm:$0xf]  ;;  %v3796_v13 = vld [vmem:[#allocation8 + $0x94] sm:$0xf0] }
  0x5c   :  { %1120 = vmatpush.bf16.msra.mxu2 %v2928_v56  ;;  %1133 = vmatpush.bf16.msra.mxu3 %v3056_v58  ;;  %v2852_v58 = vor.u32 %v3836_v47, %v2851_v46  ;;  %v2819_v14 = vld [vmem:[#allocation8 + $0x188] sm:$0xf]  ;;  %v3108_v19 = vor.u32 %v3900_v11, %v3107_v8  ;;  %v3864_v22 = vld [vmem:[#allocation8 + $0x2b4] sm:$0xf0]  ;;  %v3838_v8 = vld [vmem:[#allocation8 + $0x1ec] sm:$0xf] }
  0x5d   :  { %v3896_v25 = vld [vmem:[#allocation8 + $0x3b4] sm:$0xf0]  ;;  %v2947_v32 = vld [vmem:[#allocation8 + $0x288] sm:$0xf] }
  0x5e   :  { %1095 = vmatpush.bf16.msra.mxu0 %v2656_v51  ;;  %1108 = vmatpush.bf16.msra.mxu1 %v2784_v52  ;;  %v2724_v52 = vor.u32 %v3804_v44, %v2723_v43  ;;  %v2931_v46 = vld [vmem:[#allocation8 + $0x268] sm:$0xf]  ;;  %v3856_v47 = vld [vmem:[#allocation8 + $0x274] sm:$0xf0] }
  0x5f   :  { %v3784_v53 = vld [vmem:[#allocation8 + $0x34] sm:$0xf0]  ;;  %v2771_v54 = vld [vmem:[#allocation8 + $0x128] sm:$0xf] }
  0x60   :  { %1121 = vmatpush.bf16.msra.mxu2 %v2912_v4  ;;  %1134 = vmatpush.bf16.msra.mxu3 %v3040_v6  ;;  %v3124_v4 = vor.u32 %v3904_v59, %v3123_v55  ;;  %v2979_v6 = vld [vmem:[#allocation8 + $0x2c8] sm:$0xf]  ;;  %v3816_v55 = vld [vmem:[#allocation8 + $0x134] sm:$0xf0] }
  0x61   :  { %v2980_v17 = vor.u32 %v3868_v7, %v2979_v6  ;;  %v3852_v59 = vld [vmem:[#allocation8 + $0x254] sm:$0xf0]  ;;  %v2741_v7 = vld [vmem:[#allocation8 + $0xf8] sm:$0xf0] }
  0x62   :  { %1096 = vmatpush.bf16.msra.mxu0 %v2640_v61  ;;  %1109 = vmatpush.bf16.msra.mxu1 %v2768_v0  ;;  %v3800_v61 = vld [vmem:[#allocation8 + $0xb4] sm:$0xf0] }
  0x63   :  { %v3832_v0 = vld [vmem:[#allocation8 + $0x1b4] sm:$0xf0]  ;;  %v2708_v5 = vor.u32 %v3800_v61, %v2707_v60  ;;  %v3043_v60 = vld [vmem:[#allocation8 + $0x348] sm:$0xf] }
  0x64   :  { %1122 = vmatpush.bf16.msra.mxu2 %v2896_v15  ;;  %1135 = vmatpush.bf16.msra.mxu3 %v3024_v18  ;;  %v3828_v15 = vld [vmem:[#allocation8 + $0x194] sm:$0xf0] }
  0x65   :  { %v2820_v23 = vor.u32 %v3828_v15, %v2819_v14 }
  0x66   :  { %1097 = vmatpush.bf16.msra.mxu0 %v2624_v10  ;;  %1110 = vmatpush.bf16.msra.mxu1 %v2752_v12  ;;  %v2836_v10 = vor.u32 %v3832_v0, %v2835_v63  ;;  %v2691_v12 = vld [vmem:[#allocation8 + $0x88] sm:$0xf]  ;;  %v3884_v63 = vld [vmem:[#allocation8 + $0x354] sm:$0xf0] }
  0x67   :  { %v2692_v20 = vor.u32 %v3796_v13, %v2691_v12  ;;  %v2627_v0 = vld [vmem:[#allocation8 + $0x8] sm:$0xf]  ;;  %v3044_v11 = vor.u32 %v3884_v63, %v3043_v60  ;;  %v3848_v13 = vld [vmem:[#allocation8 + $0x234] sm:$0xf0]  ;;  %v3093_v63 = vld [vmem:[#allocation8 + $0x3b8] sm:$0xf0] }
  0x68   :  { %1123 = vmatpush.bf16.msra.mxu2 %v2880_v21  ;;  %1136 = vmatpush.bf16.msra.mxu3 %v3008_v24  ;;  %v2963_v21 = vld [vmem:[#allocation8 + $0x2a8] sm:$0xf] }
  0x69   :  { %v3091_v24 = vld [vmem:[#allocation8 + $0x3a8] sm:$0xf] }
  0x6a   :  { %v3092_v31 = vor.u32 %v3896_v25, %v3091_v24  ;;  %v2899_v12 = vld [vmem:[#allocation8 + $0x228] sm:$0xf]  ;;  %v2853_v24 = vld [vmem:[#allocation8 + $0x1d8] sm:$0xf0] }
  0xa6   :  { %v209_v28 = vpop.f32.mrf.mxu0  ;;  %v222_v30 = vpop.f32.mrf.mxu1 }
  0xa7   :  { %v210_v29 = vadd.f32 %v209_v28, %v148_v26  ;;  %v223_v33 = vadd.f32 %v222_v30, %v149_v27  ;;  %v2675_v26 = vld [vmem:[#allocation8 + $0x68] sm:$0xf]  ;;  %v3792_v27 = vld [vmem:[#allocation8 + $0x74] sm:$0xf0]  ;;  %v2964_v30 = vor.u32 %v3864_v22, %v2963_v21  ;;  %v2900_v21 = vor.u32 %v3848_v13, %v2899_v12  ;;  %v2725_v22 = vld [vmem:[#allocation8 + $0xd8] sm:$0xf0] }
  0xa8   :  { %v2803_v28 = vld [vmem:[#allocation8 + $0x168] sm:$0xf]  ;;  %v2676_v34 = vor.u32 %v3792_v27, %v2675_v26  ;;  %v3844_v27 = vld [vmem:[#allocation8 + $0x214] sm:$0xf0]  ;;  %v3890_v12 = vld [vmem:[#allocation8 + $0x38c] sm:$0xf] }
  0xa9   :  { %v252_v36 = vmax.f32 %v210_v29, 0.0  ;;  %v253_v37 = vmax.f32 %v223_v33, 0.0  ;;  %v3824_v29 = vld [vmem:[#allocation8 + $0x174] sm:$0xf0]  ;;  %v2883_v26 = vld [vmem:[#allocation8 + $0x208] sm:$0xf] }
  0xaa   :  { %v3860_v33 = vld [vmem:[#allocation8 + $0x294] sm:$0xf0]  ;;  %v2804_v35 = vor.u32 %v3824_v29, %v2803_v28  ;;  %v3011_v28 = vld [vmem:[#allocation8 + $0x308] sm:$0xf]  ;;  %v3077_v13 = vld [vmem:[#allocation8 + $0x398] sm:$0xf0] }
  0xab   :  { %v4367_v40 = vpack.c.bf16 %v252_v36, %v252_v36  ;;  %v4369_v45 = vpack.c.bf16 %v253_v37, %v253_v37  ;;  %v3075_v36 = vld [vmem:[#allocation8 + $0x388] sm:$0xf]  ;;  %v3892_v37 = vld [vmem:[#allocation8 + $0x394] sm:$0xf0]  ;;  %v2948_v43 = vor.u32 %v3860_v33, %v2947_v32 }
  0xac   :  { %v3076_v44 = vor.u32 %v3892_v37, %v3075_v36  ;;  %v3876_v29 = vld [vmem:[#allocation8 + $0x314] sm:$0xf0]  ;;  %v3798_v36 = vld [vmem:[#allocation8 + $0xac] sm:$0xf]  ;;  %v2884_v37 = vor.u32 %v3844_v27, %v2883_v26  ;;  %v2645_v27 = vld [vmem:[#allocation8 + $0x38] sm:$0xf0] }
  0xad   :  { %1046 = vmatmul.bf16.vlgmr.msrb.gmra.mxu0 %v4367_v40  ;;  %1059 = vmatmul.bf16.vlgmr.msrb.gmra.mxu1 %v4369_v45  ;;  %v3782_v26 = vld [vmem:[#allocation8 + $0x2c] sm:$0xf] }
  0xae   :  { %v235_v48 = vpop.f32.mrf.mxu2  ;;  %v248_v50 = vpop.f32.mrf.mxu3  ;;  %1142 = vmatpush.bf16.msrb.mxu0 %v2740_v39  ;;  %1155 = vmatpush.bf16.msrb.mxu1 %v2868_v42  ;;  %v3788_v39 = vld [vmem:[#allocation8 + $0x54] sm:$0xf0] }
  0xaf   :  { %v236_v49 = vadd.f32 %v235_v48, %v150_v38  ;;  %v211_v51 = vpop.f32.mrf.mxu0  ;;  %v249_v56 = vadd.f32 %v248_v50, %v151_v41  ;;  %v224_v57 = vpop.f32.mrf.mxu1  ;;  %v2659_v38 = vld [vmem:[#allocation8 + $0x48] sm:$0xf]  ;;  %v3820_v42 = vld [vmem:[#allocation8 + $0x154] sm:$0xf0] }
  0xb0   :  { %v2787_v41 = vld [vmem:[#allocation8 + $0x148] sm:$0xf]  ;;  %v2660_v48 = vor.u32 %v3788_v39, %v2659_v38  ;;  %v3888_v51 = vld [vmem:[#allocation8 + $0x374] sm:$0xf0]  ;;  %v2709_v38 = vld [vmem:[#allocation8 + $0xb8] sm:$0xf0] }
  0xb1   :  { %v254_v62 = vmax.f32 %v236_v49, 0.0  ;;  %v255_v1 = vmax.f32 %v249_v56, 0.0  ;;  %v2788_v49 = vor.u32 %v3820_v42, %v2787_v41  ;;  %v3059_v50 = vld [vmem:[#allocation8 + $0x368] sm:$0xf]  ;;  %v2932_v56 = vor.u32 %v3856_v47, %v2931_v46  ;;  %v3830_v39 = vld [vmem:[#allocation8 + $0x1ac] sm:$0xf] }
  0xb2   :  { %1143 = vmatpush.bf16.msrb.mxu0 %v2724_v52  ;;  %1156 = vmatpush.bf16.msrb.mxu1 %v2852_v58  ;;  %v2643_v52 = vld [vmem:[#allocation8 + $0x28] sm:$0xf]  ;;  %v3060_v57 = vor.u32 %v3888_v51, %v3059_v50  ;;  %v2837_v41 = vld [vmem:[#allocation8 + $0x1b8] sm:$0xf0]  ;;  %v3012_v42 = vor.u32 %v3876_v29, %v3011_v28  ;;  %v3866_v46 = vld [vmem:[#allocation8 + $0x2cc] sm:$0xf] }
  0xb3   :  { %v4373_v3 = vpack.c.bf16 %v254_v62, %v254_v62  ;;  %v4375_v9 = vpack.c.bf16 %v255_v1, %v255_v1  ;;  %v2915_v58 = vld [vmem:[#allocation8 + $0x248] sm:$0xf]  ;;  %v2644_v61 = vor.u32 %v3784_v53, %v2643_v52  ;;  %v2772_v62 = vor.u32 %v3816_v55, %v2771_v54  ;;  %v3780_v1 = vld [vmem:[#allocation8 + $0x14] sm:$0xf0]  ;;  %v2981_v47 = vld [vmem:[#allocation8 + $0x2d8] sm:$0xf0] }
  0xb4   :  { %v2916_v6 = vor.u32 %v3852_v59, %v2915_v58  ;;  %v2628_v14 = vor.u32 %v3780_v1, %v2627_v0  ;;  %v3898_v50 = vld [vmem:[#allocation8 + $0x3cc] sm:$0xf]  ;;  %v3109_v51 = vld [vmem:[#allocation8 + $0x3d8] sm:$0xf0] }
  0xb5   :  { %1072 = vmatmul.bf16.vlgmr.msrb.gmra.mxu2 %v4373_v3  ;;  %1085 = vmatmul.bf16.vlgmr.msrb.gmra.mxu3 %v4375_v9  ;;  %v3794_v52 = vld [vmem:[#allocation8 + $0x8c] sm:$0xf]  ;;  %v2693_v53 = vld [vmem:[#allocation8 + $0x98] sm:$0xf0] }
  0xb6   :  { %1168 = vmatpush.bf16.msrb.mxu2 %v2996_v2  ;;  %v237_v16 = vpop.f32.mrf.mxu2  ;;  %1181 = vmatpush.bf16.msrb.mxu3 %v3124_v4  ;;  %v250_v18 = vpop.f32.mrf.mxu3  ;;  %v2755_v2 = vld [vmem:[#allocation8 + $0x108] sm:$0xf]  ;;  %v3812_v4 = vld [vmem:[#allocation8 + $0x114] sm:$0xf0]  ;;  %v3826_v54 = vld [vmem:[#allocation8 + $0x18c] sm:$0xf]  ;;  %v2696_v60 = vor.u32 %v3794_v52, %v2693_v53 }
  0xb7   :  { %1144 = vmatpush.bf16.msrb.mxu0 %v2708_v5  ;;  %1157 = vmatpush.bf16.msrb.mxu1 %v2836_v10  ;;  %v3806_v5 = vld [vmem:[#allocation8 + $0xec] sm:$0xf]  ;;  %v2869_v10 = vld [vmem:[#allocation8 + $0x1f8] sm:$0xf0]  ;;  %v2756_v15 = vor.u32 %v3812_v4, %v2755_v2  ;;  %v3027_v16 = vld [vmem:[#allocation8 + $0x328] sm:$0xf] }
  0xb8   :  { %v2744_v18 = vor.u32 %v3806_v5, %v2741_v7  ;;  %v2821_v55 = vld [vmem:[#allocation8 + $0x198] sm:$0xf0]  ;;  %v3862_v58 = vld [vmem:[#allocation8 + $0x2ac] sm:$0xf] }
  0xb9   :  { %v2965_v59 = vld [vmem:[#allocation8 + $0x2b8] sm:$0xf0]  ;;  %v3790_v0 = vld [vmem:[#allocation8 + $0x6c] sm:$0xf] }
  0xba   :  { %1169 = vmatpush.bf16.msrb.mxu2 %v2980_v17  ;;  %1182 = vmatpush.bf16.msrb.mxu3 %v3108_v19  ;;  %v3880_v17 = vld [vmem:[#allocation8 + $0x334] sm:$0xf0]  ;;  %v2872_v19 = vor.u32 %v3838_v8, %v2869_v10  ;;  %v2677_v1 = vld [vmem:[#allocation8 + $0x78] sm:$0xf0]  ;;  %v3822_v2 = vld [vmem:[#allocation8 + $0x16c] sm:$0xf]  ;;  %v2968_v5 = vor.u32 %v3862_v58, %v2965_v59 }
  0xbb   :  { %1145 = vmatpush.bf16.msrb.mxu0 %v2692_v20  ;;  %1158 = vmatpush.bf16.msrb.mxu1 %v2820_v23  ;;  %v3802_v20 = vld [vmem:[#allocation8 + $0xcc] sm:$0xf]  ;;  %v3028_v25 = vor.u32 %v3880_v17, %v3027_v16  ;;  %v2805_v4 = vld [vmem:[#allocation8 + $0x178] sm:$0xf0]  ;;  %v2680_v10 = vor.u32 %v3790_v0, %v2677_v1 }
  0xbc   :  { %v3834_v23 = vld [vmem:[#allocation8 + $0x1cc] sm:$0xf]  ;;  %v2728_v32 = vor.u32 %v3802_v20, %v2725_v22  ;;  %v2949_v8 = vld [vmem:[#allocation8 + $0x298] sm:$0xf0] }
  0xbd   :  { %1098 = vmatmul.bf16.vlgmr.msra.gmra.mxu0 %v4367_v40  ;;  %1111 = vmatmul.bf16.vlgmr.msra.gmra.mxu1 %v4369_v45  ;;  %v2856_v33 = vor.u32 %v3834_v23, %v2853_v24  ;;  %v3858_v7 = vld [vmem:[#allocation8 + $0x28c] sm:$0xf]  ;;  %v2789_v17 = vld [vmem:[#allocation8 + $0x158] sm:$0xf0] }
  0xbe   :  { %1170 = vmatpush.bf16.msrb.mxu2 %v2964_v30  ;;  %1183 = vmatpush.bf16.msrb.mxu3 %v3092_v31  ;;  %v3870_v30 = vld [vmem:[#allocation8 + $0x2ec] sm:$0xf]  ;;  %v2997_v31 = vld [vmem:[#allocation8 + $0x2f8] sm:$0xf0] }
  0xbf   :  { %1146 = vmatpush.bf16.msrb.mxu0 %v2676_v34  ;;  %1159 = vmatpush.bf16.msrb.mxu1 %v2804_v35  ;;  %v3902_v34 = vld [vmem:[#allocation8 + $0x3ec] sm:$0xf]  ;;  %v3125_v35 = vld [vmem:[#allocation8 + $0x3f8] sm:$0xf0] }
  0xc0   :  { %v3818_v16 = vld [vmem:[#allocation8 + $0x14c] sm:$0xf]  ;;  %v2773_v29 = vld [vmem:[#allocation8 + $0x138] sm:$0xf0] }
  0xc1   :  { %v3854_v20 = vld [vmem:[#allocation8 + $0x26c] sm:$0xf]  ;;  %v2792_v23 = vor.u32 %v3818_v16, %v2789_v17  ;;  %v2885_v1 = vld [vmem:[#allocation8 + $0x218] sm:$0xf0]  ;;  %v3483_v17 = vld [vmem:[#allocation11 + $0x2c0] sm:$0xf] }
  0xc2   :  { %1171 = vmatpush.bf16.msrb.mxu2 %v2948_v43  ;;  %1184 = vmatpush.bf16.msrb.mxu3 %v3076_v44  ;;  %v3000_v43 = vor.u32 %v3870_v30, %v2997_v31  ;;  %v3128_v44 = vor.u32 %v3902_v34, %v3125_v35  ;;  %v3886_v24 = vld [vmem:[#allocation8 + $0x36c] sm:$0xf]  ;;  %v2648_v35 = vor.u32 %v3782_v26, %v2645_v27  ;;  %v3919_v26 = vld [vmem:[#allocation11 + $0x6c] sm:$0xf0] }
  0xc3   :  { %1147 = vmatpush.bf16.msrb.mxu0 %v2660_v48  ;;  %1160 = vmatpush.bf16.msrb.mxu1 %v2788_v49  ;;  %v2712_v48 = vor.u32 %v3798_v36, %v2709_v38  ;;  %v2840_v49 = vor.u32 %v3830_v39, %v2837_v41  ;;  %v3814_v28 = vld [vmem:[#allocation8 + $0x12c] sm:$0xf]  ;;  %v2629_v39 = vld [vmem:[#allocation8 + $0x18] sm:$0xf0] }
  0xc4   :  { %v3882_v34 = vld [vmem:[#allocation8 + $0x34c] sm:$0xf]  ;;  %v2776_v36 = vor.u32 %v3814_v28, %v2773_v29  ;;  %v3307_v28 = vld [vmem:[#allocation11 + $0x160] sm:$0xf]  ;;  %v3951_v29 = vld [vmem:[#allocation11 + $0x16c] sm:$0xf0] }
  0xc5   :  { %1124 = vmatmul.bf16.vlgmr.msra.gmra.mxu2 %v4373_v3  ;;  %1137 = vmatmul.bf16.vlgmr.msra.gmra.mxu3 %v4375_v9  ;;  %v3778_v38 = vld [vmem:[#allocation8 + $0xc] sm:$0xf] }
  0xc6   :  { %1172 = vmatpush.bf16.msrb.mxu2 %v2932_v56  ;;  %1185 = vmatpush.bf16.msrb.mxu3 %v3060_v57  ;;  %v2984_v56 = vor.u32 %v3866_v46, %v2981_v47  ;;  %v3112_v57 = vor.u32 %v3898_v50, %v3109_v51  ;;  %v3810_v41 = vld [vmem:[#allocation8 + $0x10c] sm:$0xf]  ;;  %v3935_v46 = vld [vmem:[#allocation11 + $0xec] sm:$0xf0]  ;;  %v3371_v47 = vld [vmem:[#allocation11 + $0x1e0] sm:$0xf]  ;;  %v2632_v52 = vor.u32 %v3778_v38, %v2629_v39 }
  0xc7   :  { %1148 = vmatpush.bf16.msrb.mxu0 %v2644_v61  ;;  %1161 = vmatpush.bf16.msrb.mxu1 %v2772_v62  ;;  %v2824_v61 = vor.u32 %v3826_v54, %v2821_v55  ;;  %v3894_v62 = vld [vmem:[#allocation8 + $0x3ac] sm:$0xf]  ;;  %v2901_v51 = vld [vmem:[#allocation8 + $0x238] sm:$0xf0]  ;;  %v3131_v39 = vld [vmem:[#allocation11] sm:$0xf] }
  0xc8   :  { %v3846_v50 = vld [vmem:[#allocation8 + $0x22c] sm:$0xf]  ;;  %v3029_v55 = vld [vmem:[#allocation8 + $0x338] sm:$0xf0] }
  0xc9   :  { %v3878_v54 = vld [vmem:[#allocation8 + $0x32c] sm:$0xf]  ;;  %v2904_v59 = vor.u32 %v3846_v50, %v2901_v51  ;;  %v3925_v50 = vld [vmem:[#allocation11 + $0xa4] sm:$0xf]  ;;  %v3213_v51 = vld [vmem:[#allocation11 + $0xb0] sm:$0xf0] }
  0xca   :  { %1173 = vmatpush.bf16.msrb.mxu2 %v2916_v6  ;;  %1186 = vmatpush.bf16.msrb.mxu3 %v3044_v11  ;;  %v3096_v6 = vor.u32 %v3894_v62, %v3093_v63  ;;  %v2808_v11 = vor.u32 %v3822_v2, %v2805_v4  ;;  %v3963_v62 = vld [vmem:[#allocation11 + $0x1cc] sm:$0xf0]  ;;  %v3032_v63 = vor.u32 %v3878_v54, %v3029_v55  ;;  %v3842_v0 = vld [vmem:[#allocation8 + $0x20c] sm:$0xf]  ;;  %v3013_v4 = vld [vmem:[#allocation8 + $0x318] sm:$0xf0] }
  0xcb   :  { %1149 = vmatpush.bf16.msrb.mxu0 %v2628_v14  ;;  %1162 = vmatpush.bf16.msrb.mxu1 %v2756_v15  ;;  %v3786_v14 = vld [vmem:[#allocation8 + $0x4c] sm:$0xf]  ;;  %v2661_v15 = vld [vmem:[#allocation8 + $0x58] sm:$0xf0]  ;;  %v3943_v54 = vld [vmem:[#allocation11 + $0x12c] sm:$0xf0] }
  0xcc   :  { %v2664_v22 = vor.u32 %v3786_v14, %v2661_v15  ;;  %v3874_v2 = vld [vmem:[#allocation8 + $0x30c] sm:$0xf]  ;;  %v3339_v14 = vld [vmem:[#allocation11 + $0x1a0] sm:$0xf]  ;;  %v3959_v15 = vld [vmem:[#allocation11 + $0x1ac] sm:$0xf0] }
  0xcd   :  { %v3467_v55 = vld [vmem:[#allocation11 + $0x2a0] sm:$0xf] }
  0xce   :  { %1174 = vmatpush.bf16.msrb.mxu2 %v2900_v21  ;;  %1187 = vmatpush.bf16.msrb.mxu3 %v3028_v25  ;;  %v2933_v21 = vld [vmem:[#allocation8 + $0x278] sm:$0xf0] }
  0xcf   :  { %1194 = vmatpush.bf16.msra.mxu0 %v2744_v18  ;;  %1207 = vmatpush.bf16.msra.mxu1 %v2872_v19  ;;  %v2952_v18 = vor.u32 %v3858_v7, %v2949_v8  ;;  %v3080_v19 = vor.u32 %v3890_v12, %v3077_v13  ;;  %v3061_v25 = vld [vmem:[#allocation8 + $0x378] sm:$0xf0]  ;;  %v2936_v30 = vor.u32 %v3854_v20, %v2933_v21  ;;  %v3927_v12 = vld [vmem:[#allocation11 + $0xac] sm:$0xf0]  ;;  %v3195_v20 = vld [vmem:[#allocation11 + $0x80] sm:$0xf] }
  0xd0   :  { %1150 = vmatmul.bf16.vlgmr.msrb.gmra.mxu0 %v4367_v40  ;;  %1163 = vmatmul.bf16.vlgmr.msrb.gmra.mxu1 %v4369_v45  ;;  %v3064_v31 = vor.u32 %v3886_v24, %v3061_v25  ;;  %v3016_v13 = vor.u32 %v3874_v2, %v3013_v4  ;;  %v3923_v21 = vld [vmem:[#allocation11 + $0x8c] sm:$0xf0] }
  0xd1   :  { %v3955_v24 = vld [vmem:[#allocation11 + $0x18c] sm:$0xf0]  ;;  %v3196_v25 = vor.u32 %v3923_v21, %v3195_v20  ;;  %v3419_v21 = vld [vmem:[#allocation11 + $0x240] sm:$0xf] }
  0xd2   :  { %1175 = vmatpush.bf16.msrb.mxu2 %v2884_v37  ;;  %1188 = vmatpush.bf16.msrb.mxu3 %v3012_v42  ;;  %v3045_v37 = vld [vmem:[#allocation8 + $0x358] sm:$0xf0]  ;;  %v3987_v2 = vld [vmem:[#allocation11 + $0x28c] sm:$0xf0] }
  0xd3   :  { %1195 = vmatpush.bf16.msra.mxu0 %v2728_v32  ;;  %1208 = vmatpush.bf16.msra.mxu1 %v2856_v33  ;;  %v3850_v32 = vld [vmem:[#allocation8 + $0x24c] sm:$0xf]  ;;  %v2917_v33 = vld [vmem:[#allocation8 + $0x258] sm:$0xf0] }
  0xd4   :  { %v2757_v42 = vld [vmem:[#allocation8 + $0x118] sm:$0xf0] }
  0xd5   :  { %1176 = vmatmul.bf16.vlgmr.msrb.gmra.mxu2 %v4373_v3  ;;  %1189 = vmatmul.bf16.vlgmr.msrb.gmra.mxu3 %v4375_v9  ;;  %v2760_v53 = vor.u32 %v3810_v41, %v2757_v42  ;;  %v3907_v41 = vld [vmem:[#allocation11 + $0xc] sm:$0xf0]  ;;  %v3933_v42 = vld [vmem:[#allocation11 + $0xe4] sm:$0xf] }
  0xd6   :  { %1220 = vmatpush.bf16.msra.mxu2 %v3000_v43  ;;  %1233 = vmatpush.bf16.msra.mxu3 %v3128_v44  ;;  %v3243_v43 = vld [vmem:[#allocation11 + $0xe0] sm:$0xf]  ;;  %v2920_v44 = vor.u32 %v3850_v32, %v2917_v33  ;;  %v3915_v32 = vld [vmem:[#allocation11 + $0x4c] sm:$0xf0]  ;;  %v3308_v33 = vor.u32 %v3951_v29, %v3307_v28 }
  0xd7   :  { %1196 = vmatpush.bf16.msra.mxu0 %v2712_v48  ;;  %1209 = vmatpush.bf16.msra.mxu1 %v2840_v49  ;;  %v3967_v48 = vld [vmem:[#allocation11 + $0x1ec] sm:$0xf0]  ;;  %v3048_v49 = vor.u32 %v3882_v34, %v3045_v37  ;;  %v3291_v34 = vld [vmem:[#allocation11 + $0x140] sm:$0xf] }
  0xd8   :  { %v3372_v58 = vor.u32 %v3967_v48, %v3371_v47  ;;  %v3911_v37 = vld [vmem:[#allocation11 + $0x2c] sm:$0xf0]  ;;  %v3929_v47 = vld [vmem:[#allocation11 + $0xc4] sm:$0xf]  ;;  %v3229_v48 = vld [vmem:[#allocation11 + $0xd0] sm:$0xf0] }
  0xd9   :  { %v3403_v28 = vld [vmem:[#allocation11 + $0x220] sm:$0xf]  ;;  %v3975_v29 = vld [vmem:[#allocation11 + $0x22c] sm:$0xf0] }
  0xda   :  { %1221 = vmatpush.bf16.msra.mxu2 %v2984_v56  ;;  %1234 = vmatpush.bf16.msra.mxu3 %v3112_v57  ;;  %v3244_v56 = vor.u32 %v3935_v46, %v3243_v43  ;;  %v3227_v57 = vld [vmem:[#allocation11 + $0xc0] sm:$0xf]  ;;  %v3245_v43 = vld [vmem:[#allocation11 + $0xf0] sm:$0xf0] }
  0xdb   :  { %1197 = vmatpush.bf16.msra.mxu0 %v2696_v60  ;;  %1210 = vmatpush.bf16.msra.mxu1 %v2824_v61  ;;  %v3931_v60 = vld [vmem:[#allocation11 + $0xcc] sm:$0xf0]  ;;  %v3355_v61 = vld [vmem:[#allocation11 + $0x1c0] sm:$0xf]  ;;  %v3248_v46 = vor.u32 %v3933_v42, %v3245_v43  ;;  %v3309_v42 = vld [vmem:[#allocation11 + $0x170] sm:$0xf0] }
  0xdc   :  { %v3228_v7 = vor.u32 %v3931_v60, %v3227_v57  ;;  %v3356_v8 = vor.u32 %v3963_v62, %v3355_v61  ;;  %v3991_v57 = vld [vmem:[#allocation11 + $0x2ac] sm:$0xf0]  ;;  %v3259_v62 = vld [vmem:[#allocation11 + $0x100] sm:$0xf] }
  0xdd   :  { %v3468_v60 = vor.u32 %v3991_v57, %v3467_v55 }
  0xde   :  { %1222 = vmatpush.bf16.msra.mxu2 %v2968_v5  ;;  %1235 = vmatpush.bf16.msra.mxu3 %v3096_v6  ;;  %v3499_v5 = vld [vmem:[#allocation11 + $0x2e0] sm:$0xf]  ;;  %v3999_v6 = vld [vmem:[#allocation11 + $0x2ec] sm:$0xf0] }
  0xdf   :  { %1198 = vmatpush.bf16.msra.mxu0 %v2680_v10  ;;  %1211 = vmatpush.bf16.msra.mxu1 %v2808_v11  ;;  %v2888_v10 = vor.u32 %v3842_v0, %v2885_v1  ;;  %v3211_v11 = vld [vmem:[#allocation11 + $0xa0] sm:$0xf]  ;;  %v3500_v16 = vor.u32 %v3999_v6, %v3499_v5  ;;  %v3917_v5 = vld [vmem:[#allocation11 + $0x64] sm:$0xf]  ;;  %v3181_v6 = vld [vmem:[#allocation11 + $0x70] sm:$0xf0] }
  0xe0   :  { %v3451_v0 = vld [vmem:[#allocation11 + $0x280] sm:$0xf] }
  0xe1   :  { %v3452_v4 = vor.u32 %v3987_v2, %v3451_v0  ;;  %v3277_v0 = vld [vmem:[#allocation11 + $0x130] sm:$0xf0] }
  0xe2   :  { %1223 = vmatpush.bf16.msra.mxu2 %v2952_v18  ;;  %1236 = vmatpush.bf16.msra.mxu3 %v3080_v19  ;;  %v3995_v18 = vld [vmem:[#allocation11 + $0x2cc] sm:$0xf0]  ;;  %v3212_v19 = vor.u32 %v3927_v12, %v3211_v11  ;;  %v3435_v11 = vld [vmem:[#allocation11 + $0x260] sm:$0xf] }
  0xe3   :  { %1199 = vmatpush.bf16.msra.mxu0 %v2664_v22  ;;  %1212 = vmatpush.bf16.msra.mxu1 %v2792_v23  ;;  %v3340_v22 = vor.u32 %v3959_v15, %v3339_v14  ;;  %v3323_v23 = vld [vmem:[#allocation11 + $0x180] sm:$0xf]  ;;  %v3983_v12 = vld [vmem:[#allocation11 + $0x26c] sm:$0xf0]  ;;  %v3913_v15 = vld [vmem:[#allocation11 + $0x44] sm:$0xf] }
  0xe4   :  { %v3324_v27 = vor.u32 %v3955_v24, %v3323_v23  ;;  %v3436_v14 = vor.u32 %v3983_v12, %v3435_v11  ;;  %v3909_v24 = vld [vmem:[#allocation11 + $0x24] sm:$0xf] }
  0xe5   :  { %v3937_v12 = vld [vmem:[#allocation11 + $0x104] sm:$0xf] }
  0xe6   :  { %1224 = vmatpush.bf16.msra.mxu2 %v2936_v30  ;;  %1237 = vmatpush.bf16.msra.mxu3 %v3064_v31  ;;  %v3163_v31 = vld [vmem:[#allocation11 + $0x40] sm:$0xf] }
  0xe7   :  { %1200 = vmatpush.bf16.msra.mxu0 %v2648_v35  ;;  %1213 = vmatpush.bf16.msra.mxu1 %v2776_v36  ;;  %v3947_v35 = vld [vmem:[#allocation11 + $0x14c] sm:$0xf0]  ;;  %v3147_v36 = vld [vmem:[#allocation11 + $0x20] sm:$0xf] }
  0xe8   :  { %v3148_v38 = vor.u32 %v3911_v37, %v3147_v36  ;;  %v3387_v36 = vld [vmem:[#allocation11 + $0x200] sm:$0xf]  ;;  %v3971_v37 = vld [vmem:[#allocation11 + $0x20c] sm:$0xf0] }
  0xea   :  { %1225 = vmatpush.bf16.msra.mxu2 %v2920_v44  ;;  %1238 = vmatpush.bf16.msra.mxu3 %v3048_v49  ;;  %v3132_v44 = vor.u32 %v3907_v41, %v3131_v39  ;;  %v3232_v49 = vor.u32 %v3929_v47, %v3229_v48  ;;  %v4031_v39 = vld [vmem:[#allocation11 + $0x3ec] sm:$0xf0]  ;;  %v3949_v41 = vld [vmem:[#allocation11 + $0x164] sm:$0xf]  ;;  %v3501_v47 = vld [vmem:[#allocation11 + $0x2f0] sm:$0xf0] }
  0xeb   :  { %1201 = vmatpush.bf16.msra.mxu0 %v2632_v52  ;;  %1214 = vmatpush.bf16.msra.mxu1 %v2760_v53  ;;  %v3216_v52 = vor.u32 %v3925_v50, %v3213_v51  ;;  %v3275_v53 = vld [vmem:[#allocation11 + $0x120] sm:$0xf]  ;;  %v4027_v50 = vld [vmem:[#allocation11 + $0x3cc] sm:$0xf0] }
  0xee   :  { %1226 = vmatpush.bf16.msra.mxu2 %v2904_v59  ;;  %1239 = vmatpush.bf16.msra.mxu3 %v3032_v63  ;;  %v3197_v59 = vld [vmem:[#allocation11 + $0x90] sm:$0xf0]  ;;  %v3939_v63 = vld [vmem:[#allocation11 + $0x10c] sm:$0xf0] }
  0xef   :  { %2032 = vmatpush.bf16.msrb.mxu0 %v3244_v56  ;;  %2045 = vmatpush.bf16.msrb.mxu1 %v3372_v58  ;;  %v3276_v56 = vor.u32 %v3943_v54, %v3275_v53  ;;  %v3921_v58 = vld [vmem:[#allocation11 + $0x84] sm:$0xf]  ;;  %v3260_v1 = vor.u32 %v3939_v63, %v3259_v62  ;;  %v3293_v53 = vld [vmem:[#allocation11 + $0x150] sm:$0xf0] }
  0xf0   :  { %1202 = vmatmul.bf16.vlgmr.msra.gmra.mxu0 %v4367_v40  ;;  %1215 = vmatmul.bf16.vlgmr.msra.gmra.mxu1 %v4369_v45  ;;  %v3484_v40 = vor.u32 %v3995_v18, %v3483_v17  ;;  %v3179_v45 = vld [vmem:[#allocation11 + $0x60] sm:$0xf]  ;;  %v3200_v61 = vor.u32 %v3921_v58, %v3197_v59  ;;  %v3961_v17 = vld [vmem:[#allocation11 + $0x1c4] sm:$0xf]  ;;  %v4391_v58 = vld [vmem:[#allocation10] sm:$0xf] }
  0xf1   :  { %v3180_v30 = vor.u32 %v3919_v26, %v3179_v45  ;;  %v3341_v26 = vld [vmem:[#allocation11 + $0x1b0] sm:$0xf0]  ;;  %v3993_v54 = vld [vmem:[#allocation11 + $0x2c4] sm:$0xf]  ;;  %v3595_v59 = vld [vmem:[#allocation11 + $0x3a0] sm:$0xf] }
  0xf2   :  { %1227 = vmatpush.bf16.msra.mxu2 %v2888_v10  ;;  %1240 = vmatpush.bf16.msra.mxu3 %v3016_v13  ;;  %v3373_v10 = vld [vmem:[#allocation11 + $0x1f0] sm:$0xf0]  ;;  %v3941_v63 = vld [vmem:[#allocation11 + $0x124] sm:$0xf] }
  0xf3   :  { %2033 = vmatpush.bf16.msrb.mxu0 %v3228_v7  ;;  %2046 = vmatpush.bf16.msrb.mxu1 %v3356_v8  ;;  %v3965_v7 = vld [vmem:[#allocation11 + $0x1e4] sm:$0xf]  ;;  %v3184_v8 = vor.u32 %v3917_v5, %v3181_v6  ;;  %v3469_v5 = vld [vmem:[#allocation11 + $0x2b0] sm:$0xf0]  ;;  %v390_v6 = vperm.slane %v4391_v58, 0 }
  0xf4   :  { %v3376_v13 = vor.u32 %v3965_v7, %v3373_v10  ;;  %v4019_v10 = vld [vmem:[#allocation11 + $0x38c] sm:$0xf0] }
  0xf5   :  { %1228 = vmatmul.bf16.vlgmr.msra.gmra.mxu2 %v4373_v3  ;;  %1241 = vmatmul.bf16.vlgmr.msra.gmra.mxu3 %v4375_v9  ;;  %v3164_v3 = vor.u32 %v3915_v32, %v3163_v31  ;;  %v3292_v9 = vor.u32 %v3947_v35, %v3291_v34  ;;  %v3905_v31 = vld [vmem:[#allocation11 + $0x4] sm:$0xf]  ;;  %v3133_v32 = vld [vmem:[#allocation11 + $0x10] sm:$0xf0] }
  0xf6   :  { %2058 = vmatpush.bf16.msrb.mxu2 %v3500_v16  ;;  %v3165_v16 = vld [vmem:[#allocation11 + $0x50] sm:$0xf0]  ;;  %v3136_v34 = vor.u32 %v3905_v31, %v3133_v32 }
  0xf7   :  { %2034 = vmatpush.bf16.msrb.mxu0 %v3212_v19  ;;  %2047 = vmatpush.bf16.msrb.mxu1 %v3340_v22  ;;  %v3168_v18 = vor.u32 %v3913_v15, %v3165_v16  ;;  %v3357_v19 = vld [vmem:[#allocation11 + $0x1d0] sm:$0xf0]  ;;  %v3979_v22 = vld [vmem:[#allocation11 + $0x24c] sm:$0xf0] }
  0xf8   :  { %v3360_v20 = vor.u32 %v3961_v17, %v3357_v19  ;;  %v3420_v23 = vor.u32 %v3979_v22, %v3419_v21  ;;  %v3325_v35 = vld [vmem:[#allocation11 + $0x190] sm:$0xf0]  ;;  %v3563_v19 = vld [vmem:[#allocation11 + $0x360] sm:$0xf] }
  0xf9   :  { %v3453_v16 = vld [vmem:[#allocation11 + $0x290] sm:$0xf0] }
  0xfa   :  { %2059 = vmatpush.bf16.msrb.mxu2 %v3484_v40  ;;  %v3149_v40 = vld [vmem:[#allocation11 + $0x30] sm:$0xf0] }
  0xfb   :  { %2035 = vmatpush.bf16.msrb.mxu0 %v3196_v25  ;;  %2048 = vmatpush.bf16.msrb.mxu1 %v3324_v27  ;;  %v3957_v25 = vld [vmem:[#allocation11 + $0x1a4] sm:$0xf]  ;;  %v3152_v45 = vor.u32 %v3909_v24, %v3149_v40  ;;  %v3437_v24 = vld [vmem:[#allocation11 + $0x270] sm:$0xf0] }
  0xfc   :  { %v3344_v27 = vor.u32 %v3957_v25, %v3341_v26  ;;  %v3547_v26 = vld [vmem:[#allocation11 + $0x340] sm:$0xf] }
  0xfe   :  { %2060 = vmatpush.bf16.msrb.mxu2 %v3468_v60  ;;  %v4023_v60 = vld [vmem:[#allocation11 + $0x3ac] sm:$0xf0] }
  0xff   :  { %2036 = vmatpush.bf16.msrb.mxu0 %v3180_v30  ;;  %2049 = vmatpush.bf16.msrb.mxu1 %v3308_v33  ;;  %v3404_v30 = vor.u32 %v3975_v29, %v3403_v28  ;;  %v3953_v33 = vld [vmem:[#allocation11 + $0x184] sm:$0xf]  ;;  %v3596_v62 = vor.u32 %v4023_v60, %v3595_v59 }
 0x100   :  { %v3977_v29 = vld [vmem:[#allocation11 + $0x244] sm:$0xf] }
 0x102   :  { %2061 = vmatpush.bf16.msrb.mxu2 %v3452_v4  ;;  %v3280_v4 = vor.u32 %v3941_v63, %v3277_v0 }
 0x103   :  { %2037 = vmatpush.bf16.msrb.mxu0 %v3164_v3  ;;  %2050 = vmatpush.bf16.msrb.mxu1 %v3292_v9  ;;  %v3328_v3 = vor.u32 %v3953_v33, %v3325_v35  ;;  %v3627_v9 = vld [vmem:[#allocation11 + $0x3e0] sm:$0xf]  ;;  %v3251_v35 = vld [vmem:[#allocation11 + $0xe8] sm:$0xf] }
 0x104   :  { %v3628_v43 = vor.u32 %v4031_v39, %v3627_v9 }
 0x106   :  { %2062 = vmatpush.bf16.msrb.mxu2 %v3436_v14  ;;  %2071 = vmatpush.bf16.msrb.mxu3 %v3628_v43  ;;  %v3985_v14 = vld [vmem:[#allocation11 + $0x284] sm:$0xf] }
 0x107   :  { %2038 = vmatpush.bf16.msrb.mxu0 %v3148_v38  ;;  %2051 = vmatpush.bf16.msrb.mxu1 %v3276_v56  ;;  %v3388_v38 = vor.u32 %v3971_v37, %v3387_v36  ;;  %v3485_v56 = vld [vmem:[#allocation11 + $0x2d0] sm:$0xf0]  ;;  %v4007_v36 = vld [vmem:[#allocation11 + $0x32c] sm:$0xf0] }
 0x108   :  { %v3488_v57 = vor.u32 %v3993_v54, %v3485_v56  ;;  %v3389_v56 = vld [vmem:[#allocation11 + $0x210] sm:$0xf0] }
 0x10a   :  { %2063 = vmatpush.bf16.msrb.mxu2 %v3420_v23  ;;  %v3981_v23 = vld [vmem:[#allocation11 + $0x264] sm:$0xf] }
 0x10b   :  { %2039 = vmatpush.bf16.msrb.mxu0 %v3132_v44  ;;  %2052 = vmatpush.bf16.msrb.mxu1 %v3260_v1  ;;  %v3312_v44 = vor.u32 %v3949_v41, %v3309_v42  ;;  %v3989_v1 = vld [vmem:[#allocation11 + $0x2a4] sm:$0xf]  ;;  %v3440_v25 = vor.u32 %v3981_v23, %v3437_v24  ;;  %v3405_v42 = vld [vmem:[#allocation11 + $0x230] sm:$0xf0]  ;;  %v3920_v23 = vld [vmem:[#allocation11 + $0x74] sm:$0xf0] }
 0x10c   :  { %v3472_v7 = vor.u32 %v3989_v1, %v3469_v5  ;;  %v3973_v41 = vld [vmem:[#allocation11 + $0x224] sm:$0xf]  ;;  %v3219_v1 = vld [vmem:[#allocation11 + $0xa8] sm:$0xf]  ;;  %v3928_v5 = vld [vmem:[#allocation11 + $0xb4] sm:$0xf0] }
 0x10d   :  { %v3379_v24 = vld [vmem:[#allocation11 + $0x1e8] sm:$0xf] }
 0x10e   :  { %2064 = vmatpush.bf16.msrb.mxu2 %v3404_v30  ;;  %v3421_v30 = vld [vmem:[#allocation11 + $0x250] sm:$0xf0] }
 0x10f   :  { %2084 = vmatpush.bf16.msra.mxu0 %v3248_v46  ;;  %2097 = vmatpush.bf16.msra.mxu1 %v3376_v13  ;;  %v3997_v46 = vld [vmem:[#allocation11 + $0x2e4] sm:$0xf]  ;;  %v3261_v13 = vld [vmem:[#allocation11 + $0x110] sm:$0xf0]  ;;  %v3424_v32 = vor.u32 %v3977_v29, %v3421_v30 }
 0x110   :  { %v3504_v48 = vor.u32 %v3997_v46, %v3501_v47  ;;  %v3264_v15 = vor.u32 %v3937_v12, %v3261_v13  ;;  %v391_v47 = vperm.slane %v4391_v58, 1  ;;  %v3203_v12 = vld [vmem:[#allocation11 + $0x88] sm:$0xf] }
 0x112   :  { %2065 = vmatpush.bf16.msrb.mxu2 %v3388_v38  ;;  %v3936_v38 = vld [vmem:[#allocation11 + $0xf4] sm:$0xf0] }
 0x113   :  { %2085 = vmatpush.bf16.msra.mxu0 %v3232_v49  ;;  %2098 = vmatpush.bf16.msra.mxu1 %v3360_v20  ;;  %v3611_v49 = vld [vmem:[#allocation11 + $0x3c0] sm:$0xf]  ;;  %v4015_v20 = vld [vmem:[#allocation11 + $0x36c] sm:$0xf0] }
 0x114   :  { %v3612_v51 = vor.u32 %v4027_v50, %v3611_v49  ;;  %v3564_v22 = vor.u32 %v4015_v20, %v3563_v19  ;;  %v3252_v49 = vor.u32 %v3936_v38, %v3251_v35  ;;  %v3932_v50 = vld [vmem:[#allocation11 + $0xd4] sm:$0xf0]  ;;  %v3363_v35 = vld [vmem:[#allocation11 + $0x1c8] sm:$0xf]  ;;  %v392_v38 = vperm.slane %v4391_v58, 2 }
 0x116   :  { %2110 = vmatpush.bf16.msra.mxu2 %v3504_v48  ;;  %2072 = vmatpush.bf16.msrb.mxu3 %v3612_v51  ;;  %v3235_v48 = vld [vmem:[#allocation11 + $0xc8] sm:$0xf]  ;;  %v3515_v51 = vld [vmem:[#allocation11 + $0x300] sm:$0xf] }
 0x117   :  { %2086 = vmatpush.bf16.msra.mxu0 %v3216_v52  ;;  %2099 = vmatpush.bf16.msra.mxu1 %v3344_v27  ;;  %v3945_v52 = vld [vmem:[#allocation11 + $0x144] sm:$0xf]  ;;  %v4011_v27 = vld [vmem:[#allocation11 + $0x34c] sm:$0xf0]  ;;  %v3236_v0 = vor.u32 %v3932_v50, %v3235_v48  ;;  %v3347_v48 = vld [vmem:[#allocation11 + $0x1a8] sm:$0xf] }
 0x118   :  { %v3296_v55 = vor.u32 %v3945_v52, %v3293_v53  ;;  %v3548_v28 = vor.u32 %v4011_v27, %v3547_v26  ;;  %v4003_v52 = vld [vmem:[#allocation11 + $0x30c] sm:$0xf0]  ;;  %v3581_v26 = vld [vmem:[#allocation11 + $0x390] sm:$0xf0]  ;;  %v4009_v50 = vld [vmem:[#allocation11 + $0x344] sm:$0xf] }
 0x119   :  { %v3516_v54 = vor.u32 %v4003_v52, %v3515_v51  ;;  %v3549_v51 = vld [vmem:[#allocation11 + $0x350] sm:$0xf0] }
 0x11a   :  { %2111 = vmatpush.bf16.msra.mxu2 %v3488_v57  ;;  %2073 = vmatpush.bf16.msrb.mxu3 %v3596_v62  ;;  %v4029_v57 = vld [vmem:[#allocation11 + $0x3e4] sm:$0xf] }
 0x11b   :  { %2087 = vmatpush.bf16.msra.mxu0 %v3200_v61  ;;  %2100 = vmatpush.bf16.msra.mxu1 %v3328_v3  ;;  %v3531_v3 = vld [vmem:[#allocation11 + $0x320] sm:$0xf] }
 0x11c   :  { %v3532_v39 = vor.u32 %v4007_v36, %v3531_v3  ;;  %v3964_v36 = vld [vmem:[#allocation11 + $0x1d4] sm:$0xf0] }
 0x11e   :  { %2112 = vmatpush.bf16.msra.mxu2 %v3472_v7  ;;  %v3613_v7 = vld [vmem:[#allocation11 + $0x3d0] sm:$0xf0] }
 0x11f   :  { %2088 = vmatpush.bf16.msra.mxu0 %v3184_v8  ;;  %2101 = vmatpush.bf16.msra.mxu1 %v3312_v44  ;;  %v3579_v8 = vld [vmem:[#allocation11 + $0x380] sm:$0xf]  ;;  %v3408_v44 = vor.u32 %v3973_v41, %v3405_v42 }
 0x120   :  { %v3580_v11 = vor.u32 %v4019_v10, %v3579_v8 }
 0x122   :  { %2074 = vmatpush.bf16.msrb.mxu3 %v3580_v11  ;;  %v3220_v11 = vor.u32 %v3928_v5, %v3219_v1  ;;  %v3533_v1 = vld [vmem:[#allocation11 + $0x330] sm:$0xf0]  ;;  %v3253_v5 = vld [vmem:[#allocation11 + $0xf8] sm:$0xf0] }
 0x123   :  { %2089 = vmatpush.bf16.msra.mxu0 %v3168_v18  ;;  %2102 = vmatpush.bf16.msra.mxu1 %v3296_v55  ;;  %v3456_v18 = vor.u32 %v3985_v14, %v3453_v16  ;;  %v3969_v55 = vld [vmem:[#allocation11 + $0x204] sm:$0xf]  ;;  %v3924_v14 = vld [vmem:[#allocation11 + $0x94] sm:$0xf0]  ;;  %v3597_v16 = vld [vmem:[#allocation11 + $0x3b0] sm:$0xf0] }
 0x124   :  { %v3392_v60 = vor.u32 %v3969_v55, %v3389_v56  ;;  %v3552_v55 = vor.u32 %v4009_v50, %v3549_v51  ;;  %v3459_v50 = vld [vmem:[#allocation11 + $0x288] sm:$0xf]  ;;  %v3988_v51 = vld [vmem:[#allocation11 + $0x294] sm:$0xf0] }
 0x125   :  { %2113 = vmatpush.bf16.msra.mxu2 %v3456_v18 }
 0x126   :  { %2075 = vmatpush.bf16.msrb.mxu3 %v3564_v22  ;;  %v3187_v22 = vld [vmem:[#allocation11 + $0x68] sm:$0xf] }
 0x127   :  { %2090 = vmatpush.bf16.msra.mxu0 %v3152_v45  ;;  %2103 = vmatpush.bf16.msra.mxu1 %v3280_v4 }
 0x129   :  { %2114 = vmatpush.bf16.msra.mxu2 %v3440_v25  ;;  %v3968_v25 = vld [vmem:[#allocation11 + $0x1f4] sm:$0xf0] }
 0x12a   :  { %v1047_v61 = vpop.f32.mrf.mxu0  ;;  %v1060_v2 = vpop.f32.mrf.mxu1  ;;  %2076 = vmatpush.bf16.msrb.mxu3 %v3548_v28 }
 0x12b   :  { %2091 = vmatpush.bf16.msra.mxu0 %v3136_v34  ;;  %v1048_v17 = vadd.f32 %v1047_v61, %v390_v6  ;;  %2104 = vmatpush.bf16.msra.mxu1 %v3264_v15  ;;  %v3629_v61 = vld [vmem:[#allocation11 + $0x3f0] sm:$0xf0]  ;;  %v4025_v6 = vld [vmem:[#allocation11 + $0x3c4] sm:$0xf] }
 0x12c   :  { %v3632_v63 = vor.u32 %v4029_v57, %v3629_v61  ;;  %v3616_v10 = vor.u32 %v4025_v6, %v3613_v7  ;;  %v4021_v15 = vld [vmem:[#allocation11 + $0x3a4] sm:$0xf]  ;;  %v3908_v61 = vld [vmem:[#allocation11 + $0x14] sm:$0xf0] }
 0x12d   :  { %v1061_v45 = vadd.f32 %v1060_v2, %v1048_v17  ;;  %2115 = vmatpush.bf16.msra.mxu2 %v3424_v32  ;;  %v3600_v18 = vor.u32 %v4021_v15, %v3597_v16  ;;  %v3380_v32 = vor.u32 %v3968_v25, %v3379_v24  ;;  %v3507_v16 = vld [vmem:[#allocation11 + $0x2e8] sm:$0xf] }
 0x12e   :  { %2077 = vmatpush.bf16.msrb.mxu3 %v3532_v39 }
 0x131   :  { %2116 = vmatpush.bf16.msra.mxu2 %v3408_v44  ;;  %v3364_v44 = vor.u32 %v3964_v36, %v3363_v35 }
 0x132   :  { %v1049_v21 = vpop.f32.mrf.mxu0  ;;  %v1062_v40 = vpop.f32.mrf.mxu1  ;;  %2078 = vmatpush.bf16.msrb.mxu3 %v3516_v54 }
 0x133   :  { %v3204_v21 = vor.u32 %v3924_v14, %v3203_v12  ;;  %v3952_v14 = vld [vmem:[#allocation11 + $0x174] sm:$0xf0] }
 0x135   :  { %2117 = vmatpush.bf16.msra.mxu2 %v3392_v60  ;;  %v3139_v60 = vld [vmem:[#allocation11 + $0x8] sm:$0xf] }
 0x136   :  { %2123 = vmatpush.bf16.msra.mxu3 %v3632_v63  ;;  %v3956_v63 = vld [vmem:[#allocation11 + $0x194] sm:$0xf0] }
 0x138   :  { %v1073_v31 = vpop.f32.mrf.mxu2  ;;  %v1086_v34 = vpop.f32.mrf.mxu3 }
 0x139   :  { %v1074_v33 = vadd.f32 %v1073_v31, %v1061_v45  ;;  %v4017_v45 = vld [vmem:[#allocation11 + $0x384] sm:$0xf]  ;;  %v3188_v31 = vor.u32 %v3920_v23, %v3187_v22  ;;  %v3237_v22 = vld [vmem:[#allocation11 + $0xd8] sm:$0xf0] }
 0x13a   :  { %v1099_v9 = vpop.f32.mrf.mxu0  ;;  %v1112_v43 = vpop.f32.mrf.mxu1  ;;  %2124 = vmatpush.bf16.msra.mxu3 %v3616_v10  ;;  %v3584_v28 = vor.u32 %v4017_v45, %v3581_v26  ;;  %v3299_v26 = vld [vmem:[#allocation11 + $0x148] sm:$0xf] }
 0x13b   :  { %v1087_v37 = vadd.f32 %v1086_v34, %v1074_v33  ;;  %v1100_v2 = vadd.f32 %v1099_v9, %v391_v47  ;;  %v3171_v33 = vld [vmem:[#allocation11 + $0x48] sm:$0xf]  ;;  %v3916_v34 = vld [vmem:[#allocation11 + $0x54] sm:$0xf0]  ;;  %v3565_v9 = vld [vmem:[#allocation11 + $0x370] sm:$0xf0] }
 0x13c   :  { %v3912_v47 = vld [vmem:[#allocation11 + $0x34] sm:$0xf0] }
 0x13d   :  { %v1246_v46 = vmax.f32 %v1087_v37, 0.0  ;;  %v1113_v13 = vadd.f32 %v1112_v43, %v1100_v2  ;;  %v4013_v37 = vld [vmem:[#allocation11 + $0x364] sm:$0xf]  ;;  %v3172_v43 = vor.u32 %v3916_v34, %v3171_v33 }
 0x13e   :  { %2125 = vmatpush.bf16.msra.mxu3 %v3600_v18  ;;  %v3568_v41 = vor.u32 %v4013_v37, %v3565_v9  ;;  %v3517_v18 = vld [vmem:[#allocation11 + $0x310] sm:$0xf0]  ;;  %v3283_v9 = vld [vmem:[#allocation11 + $0x128] sm:$0xf] }
 0x13f   :  { %v4395_v53 = vpack.c.bf16 %v1246_v46, %v1246_v46  ;;  %v3155_v46 = vld [vmem:[#allocation11 + $0x28] sm:$0xf] }
 0x140   :  { %v1075_v59 = vpop.f32.mrf.mxu2  ;;  %v1088_v62 = vpop.f32.mrf.mxu3  ;;  %v3156_v57 = vor.u32 %v3912_v47, %v3155_v46 }
 0x141   :  { %2040 = vmatmul.bf16.vlgmr.msrb.gmra.mxu0 %v4395_v53  ;;  %v3331_v62 = vld [vmem:[#allocation11 + $0x188] sm:$0xf] }
 0x142   :  { %2136 = vmatpush.bf16.msrb.mxu0 %v3252_v49  ;;  %v1101_v4 = vpop.f32.mrf.mxu0  ;;  %v1114_v8 = vpop.f32.mrf.mxu1  ;;  %2126 = vmatpush.bf16.msra.mxu3 %v3584_v28  ;;  %v3960_v49 = vld [vmem:[#allocation11 + $0x1b4] sm:$0xf0]  ;;  %v3332_v12 = vor.u32 %v3956_v63, %v3331_v62  ;;  %v3491_v28 = vld [vmem:[#allocation11 + $0x2c8] sm:$0xf]  ;;  %v3460_v62 = vor.u32 %v3988_v51, %v3459_v50 }
 0x143   :  { %v3348_v59 = vor.u32 %v3960_v49, %v3347_v48  ;;  %v3934_v4 = vld [vmem:[#allocation11 + $0xec] sm:$0xf]  ;;  %v3267_v48 = vld [vmem:[#allocation11 + $0x108] sm:$0xf]  ;;  %v3940_v49 = vld [vmem:[#allocation11 + $0x114] sm:$0xf0] }
 0x144   :  { %v3256_v15 = vor.u32 %v3934_v4, %v3253_v5  ;;  %v3914_v4 = vld [vmem:[#allocation11 + $0x4c] sm:$0xf]  ;;  %v3173_v5 = vld [vmem:[#allocation11 + $0x58] sm:$0xf0]  ;;  %v3619_v51 = vld [vmem:[#allocation11 + $0x3c8] sm:$0xf] }
 0x146   :  { %2137 = vmatpush.bf16.msrb.mxu0 %v3236_v0  ;;  %2127 = vmatpush.bf16.msra.mxu3 %v3568_v41  ;;  %v4005_v0 = vld [vmem:[#allocation11 + $0x324] sm:$0xf]  ;;  %v3992_v41 = vld [vmem:[#allocation11 + $0x2b4] sm:$0xf0] }
 0x147   :  { %v3536_v6 = vor.u32 %v4005_v0, %v3533_v1  ;;  %v3443_v0 = vld [vmem:[#allocation11 + $0x268] sm:$0xf] }
 0x148   :  { %v1125_v17 = vpop.f32.mrf.mxu2  ;;  %v1138_v20 = vpop.f32.mrf.mxu3 }
 0x149   :  { %v1126_v19 = vadd.f32 %v1125_v17, %v1113_v13  ;;  %v3315_v13 = vld [vmem:[#allocation11 + $0x168] sm:$0xf]  ;;  %v4001_v17 = vld [vmem:[#allocation11 + $0x304] sm:$0xf] }
 0x14a   :  { %2138 = vmatpush.bf16.msrb.mxu0 %v3220_v11  ;;  %2128 = vmatpush.bf16.msra.mxu3 %v3552_v55  ;;  %v3140_v11 = vor.u32 %v3908_v61, %v3139_v60  ;;  %v3520_v23 = vor.u32 %v4001_v17, %v3517_v18  ;;  %v3268_v60 = vor.u32 %v3940_v49, %v3267_v48  ;;  %v393_v61 = vperm.slane %v4391_v58, 3  ;;  %v3958_v17 = vld [vmem:[#allocation11 + $0x1ac] sm:$0xf]  ;;  %v3349_v18 = vld [vmem:[#allocation11 + $0x1b8] sm:$0xf0] }
 0x14b   :  { %v1139_v40 = vadd.f32 %v1138_v20, %v1126_v19  ;;  %v4000_v20 = vld [vmem:[#allocation11 + $0x2f4] sm:$0xf0] }
 0x14c   :  { %v3508_v25 = vor.u32 %v4000_v20, %v3507_v16 }
 0x14d   :  { %v1151_v27 = vpop.f32.mrf.mxu0  ;;  %v1247_v29 = vmax.f32 %v1139_v40, 0.0  ;;  %v1164_v30 = vpop.f32.mrf.mxu1  ;;  %v3316_v40 = vor.u32 %v3952_v14, %v3315_v13  ;;  %v3980_v13 = vld [vmem:[#allocation11 + $0x254] sm:$0xf0]  ;;  %v3910_v14 = vld [vmem:[#allocation11 + $0x2c] sm:$0xf] }
 0x14e   :  { %2139 = vmatpush.bf16.msrb.mxu0 %v3204_v21  ;;  %v1152_v52 = vadd.f32 %v1151_v27, %v392_v38  ;;  %2129 = vmatpush.bf16.msra.mxu3 %v3536_v6  ;;  %v3930_v21 = vld [vmem:[#allocation11 + $0xcc] sm:$0xf]  ;;  %v3948_v27 = vld [vmem:[#allocation11 + $0x154] sm:$0xf0] }
 0x14f   :  { %v4398_v3 = vpack.c.bf16 %v1247_v29, %v1247_v29  ;;  %v3240_v45 = vor.u32 %v3930_v21, %v3237_v22  ;;  %v3300_v35 = vor.u32 %v3948_v27, %v3299_v26  ;;  %v3944_v38 = vld [vmem:[#allocation11 + $0x134] sm:$0xf0]  ;;  %v3962_v6 = vld [vmem:[#allocation11 + $0x1cc] sm:$0xf]  ;;  %v3411_v22 = vld [vmem:[#allocation11 + $0x228] sm:$0xf] }
 0x150   :  { %v1127_v39 = vpop.f32.mrf.mxu2  ;;  %v1140_v42 = vpop.f32.mrf.mxu3  ;;  %v1165_v2 = vadd.f32 %v1164_v30, %v1152_v52  ;;  %v3996_v30 = vld [vmem:[#allocation11 + $0x2d4] sm:$0xf0]  ;;  %v3918_v52 = vld [vmem:[#allocation11 + $0x6c] sm:$0xf] }
 0x151   :  { %2053 = vmatmul.bf16.vlgmr.msrb.gmra.mxu1 %v4398_v3  ;;  %2092 = vmatmul.bf16.vlgmr.msra.gmra.mxu0 %v4395_v53  ;;  %v3492_v36 = vor.u32 %v3996_v30, %v3491_v28  ;;  %v3475_v39 = vld [vmem:[#allocation11 + $0x2a8] sm:$0xf]  ;;  %v3922_v42 = vld [vmem:[#allocation11 + $0x8c] sm:$0xf]  ;;  %v3333_v28 = vld [vmem:[#allocation11 + $0x198] sm:$0xf0] }
 0x152   :  { %2140 = vmatpush.bf16.msrb.mxu0 %v3188_v31  ;;  %2149 = vmatpush.bf16.msrb.mxu1 %v3380_v32  ;;  %v3926_v31 = vld [vmem:[#allocation11 + $0xac] sm:$0xf]  ;;  %v3221_v32 = vld [vmem:[#allocation11 + $0xb8] sm:$0xf0]  ;;  %v3476_v46 = vor.u32 %v3992_v41, %v3475_v39 }
 0x153   :  { %2130 = vmatpush.bf16.msra.mxu3 %v3520_v23  ;;  %v3224_v37 = vor.u32 %v3926_v31, %v3221_v32  ;;  %v3954_v27 = vld [vmem:[#allocation11 + $0x18c] sm:$0xf]  ;;  %v3317_v41 = vld [vmem:[#allocation11 + $0x178] sm:$0xf0] }
 0x154   :  { %v3950_v39 = vld [vmem:[#allocation11 + $0x16c] sm:$0xf] }
 0x155   :  { %v1153_v54 = vpop.f32.mrf.mxu0  ;;  %v1166_v56 = vpop.f32.mrf.mxu1  ;;  %v3320_v49 = vor.u32 %v3950_v39, %v3317_v41  ;;  %v3637_v39 = vld [vmem:[#allocation11 + $0x3f8] sm:$0xf0] }
 0x156   :  { %2141 = vmatpush.bf16.msrb.mxu0 %v3172_v43  ;;  %2150 = vmatpush.bf16.msrb.mxu1 %v3364_v44  ;;  %v3205_v43 = vld [vmem:[#allocation11 + $0x98] sm:$0xf0]  ;;  %v3284_v44 = vor.u32 %v3944_v38, %v3283_v9  ;;  %v3966_v56 = vld [vmem:[#allocation11 + $0x1ec] sm:$0xf]  ;;  %v3635_v9 = vld [vmem:[#allocation11 + $0x3e8] sm:$0xf] }
 0x157   :  { %v3208_v47 = vor.u32 %v3922_v42, %v3205_v43  ;;  %v3189_v54 = vld [vmem:[#allocation11 + $0x78] sm:$0xf0]  ;;  %v4032_v38 = vld [vmem:[#allocation11 + $0x3f4] sm:$0xf0]  ;;  %v3998_v42 = vld [vmem:[#allocation11 + $0x2ec] sm:$0xf] }
 0x158   :  { %v1177_v7 = vpop.f32.mrf.mxu2  ;;  %v1190_v8 = vpop.f32.mrf.mxu3  ;;  %v3192_v63 = vor.u32 %v3918_v52, %v3189_v54  ;;  %v3509_v43 = vld [vmem:[#allocation11 + $0x2f8] sm:$0xf0]  ;;  %v4028_v52 = vld [vmem:[#allocation11 + $0x3d4] sm:$0xf0]  ;;  %v3946_v54 = vld [vmem:[#allocation11 + $0x14c] sm:$0xf] }
 0x159   :  { %v1178_v10 = vadd.f32 %v1177_v7, %v1165_v2  ;;  %v3984_v2 = vld [vmem:[#allocation11 + $0x274] sm:$0xf0]  ;;  %v3365_v7 = vld [vmem:[#allocation11 + $0x1d8] sm:$0xf0]  ;;  %v3512_v50 = vor.u32 %v3998_v42, %v3509_v43  ;;  %v4026_v43 = vld [vmem:[#allocation11 + $0x3cc] sm:$0xf] }
 0x15a   :  { %2142 = vmatpush.bf16.msrb.mxu0 %v3156_v57  ;;  %2151 = vmatpush.bf16.msrb.mxu1 %v3348_v59  ;;  %v3381_v57 = vld [vmem:[#allocation11 + $0x1f8] sm:$0xf0]  ;;  %v3368_v58 = vor.u32 %v3962_v6, %v3365_v7 }
 0x15b   :  { %v1191_v19 = vadd.f32 %v1190_v8, %v1178_v10  ;;  %v3384_v1 = vor.u32 %v3966_v56, %v3381_v57  ;;  %v3444_v8 = vor.u32 %v3984_v2, %v3443_v0  ;;  %v3176_v10 = vor.u32 %v3914_v4, %v3173_v5  ;;  %v3301_v56 = vld [vmem:[#allocation11 + $0x158] sm:$0xf0]  ;;  %v3994_v57 = vld [vmem:[#allocation11 + $0x2cc] sm:$0xf]  ;;  %v3603_v0 = vld [vmem:[#allocation11 + $0x3a8] sm:$0xf] }
 0x15c   :  { %v3942_v2 = vld [vmem:[#allocation11 + $0x12c] sm:$0xf]  ;;  %v3285_v4 = vld [vmem:[#allocation11 + $0x138] sm:$0xf0] }
 0x15d   :  { %v1248_v24 = vmax.f32 %v1191_v19, 0.0  ;;  %v3990_v5 = vld [vmem:[#allocation11 + $0x2ac] sm:$0xf]  ;;  %v3477_v6 = vld [vmem:[#allocation11 + $0x2b8] sm:$0xf0] }
 0x15e   :  { %2143 = vmatpush.bf16.msrb.mxu0 %v3140_v11  ;;  %2152 = vmatpush.bf16.msrb.mxu1 %v3332_v12  ;;  %v3427_v11 = vld [vmem:[#allocation11 + $0x248] sm:$0xf] }
 0x15f   :  { %v4403_v29 = vpack.c.bf16 %v1248_v24, %v1248_v24  ;;  %v3428_v20 = vor.u32 %v3980_v13, %v3427_v11  ;;  %v3352_v24 = vor.u32 %v3958_v17, %v3349_v18  ;;  %v4020_v11 = vld [vmem:[#allocation11 + $0x394] sm:$0xf0]  ;;  %v3986_v13 = vld [vmem:[#allocation11 + $0x28c] sm:$0xf]  ;;  %v3571_v18 = vld [vmem:[#allocation11 + $0x368] sm:$0xf] }
 0x160   :  { %v1179_v33 = vpop.f32.mrf.mxu2  ;;  %v1192_v34 = vpop.f32.mrf.mxu3 }
 0x161   :  { %2105 = vmatmul.bf16.vlgmr.msra.gmra.mxu1 %v4398_v3  ;;  %2144 = vmatmul.bf16.vlgmr.msrb.gmra.mxu0 %v4395_v53  ;;  %v3395_v34 = vld [vmem:[#allocation11 + $0x208] sm:$0xf] }
 0x162   :  { %2188 = vmatpush.bf16.msra.mxu0 %v3256_v15  ;;  %2066 = vmatmul.bf16.vlgmr.msrb.gmra.mxu2 %v4403_v29  ;;  %v3157_v15 = vld [vmem:[#allocation11 + $0x38] sm:$0xf0] }
 0x163   :  { %2153 = vmatpush.bf16.msrb.mxu1 %v3316_v40  ;;  %2162 = vmatpush.bf16.msrb.mxu2 %v3508_v25  ;;  %v3160_v21 = vor.u32 %v3910_v14, %v3157_v15  ;;  %v3976_v40 = vld [vmem:[#allocation11 + $0x234] sm:$0xf0]  ;;  %v3906_v25 = vld [vmem:[#allocation11 + $0xc] sm:$0xf]  ;;  %v3461_v14 = vld [vmem:[#allocation11 + $0x298] sm:$0xf0] }
 0x164   :  { %v3412_v32 = vor.u32 %v3976_v40, %v3411_v22  ;;  %v3464_v17 = vor.u32 %v3986_v13, %v3461_v14  ;;  %v4012_v40 = vld [vmem:[#allocation11 + $0x354] sm:$0xf0] }
 0x165   :  { %v4036_v13 = vld [vmem:[#allocation13 + $0x18] sm:$0xff] }
 0x166   :  { %2189 = vmatpush.bf16.msra.mxu0 %v3240_v45  ;;  %v3141_v45 = vld [vmem:[#allocation11 + $0x18] sm:$0xf0] }
 0x167   :  { %2154 = vmatpush.bf16.msrb.mxu1 %v3300_v35  ;;  %2163 = vmatpush.bf16.msrb.mxu2 %v3492_v36  ;;  %v3144_v33 = vor.u32 %v3906_v25, %v3141_v45  ;;  %v3972_v35 = vld [vmem:[#allocation11 + $0x214] sm:$0xf0]  ;;  %v3978_v25 = vld [vmem:[#allocation11 + $0x24c] sm:$0xf]  ;;  %v3429_v45 = vld [vmem:[#allocation11 + $0x258] sm:$0xf0] }
 0x168   :  { %v4048_v14 = vld [vmem:[#allocation13 + $0x78] sm:$0xff] }
 0x16a   :  { %2190 = vmatpush.bf16.msra.mxu0 %v3224_v37  ;;  %v3336_v37 = vor.u32 %v3954_v27, %v3333_v28  ;;  %v3432_v27 = vor.u32 %v3978_v25, %v3429_v45  ;;  %v3539_v28 = vld [vmem:[#allocation11 + $0x328] sm:$0xf]  ;;  %v4056_v25 = vld [vmem:[#allocation13 + $0xb8] sm:$0xff]  ;;  %v4043_v45 = vld [vmem:[#allocation13 + $0x50] sm:$0xff] }
 0x16b   :  { %2155 = vmatpush.bf16.msrb.mxu1 %v3284_v44  ;;  %2164 = vmatpush.bf16.msrb.mxu2 %v3476_v46  ;;  %v3396_v46 = vor.u32 %v3972_v35, %v3395_v34  ;;  %v3523_v35 = vld [vmem:[#allocation11 + $0x308] sm:$0xf] }
 0x16d   :  { %v1203_v55 = vpop.f32.mrf.mxu0  ;;  %v1216_v59 = vpop.f32.mrf.mxu1 }
 0x16e   :  { %2191 = vmatpush.bf16.msra.mxu0 %v3208_v47  ;;  %v1204_v12 = vadd.f32 %v1203_v55, %v393_v61  ;;  %v3636_v47 = vor.u32 %v4032_v38, %v3635_v9  ;;  %v3620_v61 = vor.u32 %v4028_v52, %v3619_v51  ;;  %v3397_v9 = vld [vmem:[#allocation11 + $0x218] sm:$0xf0]  ;;  %v4030_v38 = vld [vmem:[#allocation11 + $0x3ec] sm:$0xf] }
 0x16f   :  { %2156 = vmatpush.bf16.msrb.mxu1 %v3268_v60  ;;  %2165 = vmatpush.bf16.msrb.mxu2 %v3460_v62  ;;  %v3304_v62 = vor.u32 %v3946_v54, %v3301_v56  ;;  %v3640_v42 = vor.u32 %v4030_v38, %v3637_v39  ;;  %v4018_v51 = vld [vmem:[#allocation11 + $0x38c] sm:$0xf]  ;;  %v3589_v52 = vld [vmem:[#allocation11 + $0x398] sm:$0xf0]  ;;  %v4051_v38 = vld [vmem:[#allocation13 + $0x90] sm:$0xff] }
 0x170   :  { %v1217_v23 = vadd.f32 %v1216_v59, %v1204_v12  ;;  %v3493_v59 = vld [vmem:[#allocation11 + $0x2d8] sm:$0xf0]  ;;  %v3938_v12 = vld [vmem:[#allocation11 + $0x10c] sm:$0xf]  ;;  %v3592_v54 = vor.u32 %v4018_v51, %v3589_v52  ;;  %v4049_v51 = vld [vmem:[#allocation13 + $0x80] sm:$0xff] }
 0x171   :  { %v3573_v56 = vld [vmem:[#allocation11 + $0x378] sm:$0xf0] }
 0x172   :  { %2192 = vmatpush.bf16.msra.mxu0 %v3192_v63  ;;  %2157 = vmatmul.bf16.vlgmr.msrb.gmra.mxu1 %v4398_v3  ;;  %v3496_v63 = vor.u32 %v3994_v57, %v3493_v59  ;;  %v4010_v59 = vld [vmem:[#allocation11 + $0x34c] sm:$0xf]  ;;  %v4064_v52 = vld [vmem:[#allocation13 + $0xf8] sm:$0xff] }
 0x173   :  { %2201 = vmatpush.bf16.msra.mxu1 %v3384_v1  ;;  %2118 = vmatmul.bf16.vlgmr.msra.gmra.mxu2 %v4403_v29  ;;  %v4024_v1 = vld [vmem:[#allocation11 + $0x3b4] sm:$0xf0] }
 0x174   :  { %2166 = vmatpush.bf16.msrb.mxu2 %v3444_v8  ;;  %v3604_v7 = vor.u32 %v4024_v1, %v3603_v0  ;;  %v3480_v8 = vor.u32 %v3990_v5, %v3477_v6  ;;  %v4002_v1 = vld [vmem:[#allocation11 + $0x30c] sm:$0xf]  ;;  %v4040_v6 = vld [vmem:[#allocation13 + $0x38] sm:$0xff] }
 0x175   :  { %v1205_v16 = vpop.f32.mrf.mxu0  ;;  %v1218_v19 = vpop.f32.mrf.mxu1 }
 0x176   :  { %2193 = vmatpush.bf16.msra.mxu0 %v3176_v10  ;;  %v3587_v10 = vld [vmem:[#allocation11 + $0x388] sm:$0xf]  ;;  %v4016_v19 = vld [vmem:[#allocation11 + $0x374] sm:$0xf0] }
 0x177   :  { %2202 = vmatpush.bf16.msra.mxu1 %v3368_v58  ;;  %v3269_v58 = vld [vmem:[#allocation11 + $0x118] sm:$0xf0]  ;;  %v3588_v15 = vor.u32 %v4020_v11, %v3587_v10  ;;  %v3572_v22 = vor.u32 %v4016_v19, %v3571_v18  ;;  %v4038_v10 = vld [vmem:[#allocation13 + $0x28] sm:$0xff]  ;;  %v4037_v11 = vld [vmem:[#allocation13 + $0x20] sm:$0xff] }
 0x178   :  { %v1229_v26 = vpop.f32.mrf.mxu2  ;;  %v1242_v31 = vpop.f32.mrf.mxu3  ;;  %2167 = vmatpush.bf16.msrb.mxu2 %v3428_v20  ;;  %v3272_v16 = vor.u32 %v3938_v12, %v3269_v58  ;;  %v3982_v20 = vld [vmem:[#allocation11 + $0x26c] sm:$0xf] }
 0x179   :  { %v1230_v30 = vadd.f32 %v1229_v26, %v1217_v23  ;;  %v4034_v18 = vld [vmem:[#allocation13 + $0x8] sm:$0xff] }
 0x17a   :  { %2194 = vmatpush.bf16.msra.mxu0 %v3160_v21  ;;  %v3445_v21 = vld [vmem:[#allocation11 + $0x278] sm:$0xf0]  ;;  %v4046_v19 = vld [vmem:[#allocation13 + $0x68] sm:$0xff] }
 0x17b   :  { %v1243_v36 = vadd.f32 %v1242_v31, %v1230_v30  ;;  %2203 = vmatpush.bf16.msra.mxu1 %v3352_v24  ;;  %v3448_v23 = vor.u32 %v3982_v20, %v3445_v21  ;;  %v3555_v24 = vld [vmem:[#allocation11 + $0x348] sm:$0xf]  ;;  %v4008_v30 = vld [vmem:[#allocation11 + $0x334] sm:$0xf0]  ;;  %v3974_v31 = vld [vmem:[#allocation11 + $0x22c] sm:$0xf] }
 0x17c   :  { %2168 = vmatpush.bf16.msrb.mxu2 %v3412_v32  ;;  %v3556_v26 = vor.u32 %v4012_v40, %v3555_v24  ;;  %v3413_v32 = vld [vmem:[#allocation11 + $0x238] sm:$0xf0]  ;;  %v4033_v20 = vld [vmem:[#allocation13] sm:$0xff] }
 0x17d   :  { %v1249_v44 = vmax.f32 %v1243_v36, 0.0  ;;  %v3416_v34 = vor.u32 %v3974_v31, %v3413_v32  ;;  %v4004_v36 = vld [vmem:[#allocation11 + $0x314] sm:$0xf0]  ;;  %v4045_v21 = vld [vmem:[#allocation13 + $0x60] sm:$0xff]  ;;  %v4054_v31 = vld [vmem:[#allocation13 + $0xa8] sm:$0xff] }
 0x17e   :  { %2195 = vmatpush.bf16.msra.mxu0 %v3144_v33  ;;  %v3540_v33 = vor.u32 %v4008_v30, %v3539_v28  ;;  %v3524_v41 = vor.u32 %v4004_v36, %v3523_v35  ;;  %v4044_v40 = vld [vmem:[#allocation13 + $0x58] sm:$0xff]  ;;  %v4042_v30 = vld [vmem:[#allocation13 + $0x48] sm:$0xff]  ;;  %v4041_v32 = vld [vmem:[#allocation13 + $0x40] sm:$0xff] }
 0x17f   :  { %v4411_v48 = vpack.c.bf16 %v1249_v44, %v1249_v44  ;;  %2204 = vmatpush.bf16.msra.mxu1 %v3336_v37  ;;  %v3970_v37 = vld [vmem:[#allocation11 + $0x20c] sm:$0xf]  ;;  %v3621_v44 = vld [vmem:[#allocation11 + $0x3d8] sm:$0xf0] }
 0x180   :  { %v1231_v55 = vpop.f32.mrf.mxu2  ;;  %v1244_v60 = vpop.f32.mrf.mxu3  ;;  %2169 = vmatpush.bf16.msrb.mxu2 %v3396_v46  ;;  %v3624_v46 = vor.u32 %v4026_v43, %v3621_v44  ;;  %v4050_v44 = vld [vmem:[#allocation13 + $0x88] sm:$0xff] }
 0x181   :  { %2079 = vmatmul.bf16.vlgmr.msrb.gmra.mxu3 %v4411_v48  ;;  %2196 = vmatmul.bf16.vlgmr.msra.gmra.mxu0 %v4395_v53  ;;  %v3288_v53 = vor.u32 %v3942_v2, %v3285_v4  ;;  %v4014_v55 = vld [vmem:[#allocation11 + $0x36c] sm:$0xf]  ;;  %v3557_v60 = vld [vmem:[#allocation11 + $0x358] sm:$0xf0] }
 0x182   :  { %2175 = vmatpush.bf16.msrb.mxu3 %v3636_v47  ;;  %v4022_v47 = vld [vmem:[#allocation11 + $0x3ac] sm:$0xf]  ;;  %v3576_v57 = vor.u32 %v4014_v55, %v3573_v56  ;;  %2508 = vmatpush.bf16.msrb.mxu0 %v4040_v6 }
 0x183   :  { %2205 = vmatpush.bf16.msra.mxu1 %v3320_v49  ;;  %2170 = vmatmul.bf16.vlgmr.msrb.gmra.mxu2 %v4403_v29  ;;  %v3605_v49 = vld [vmem:[#allocation11 + $0x3b8] sm:$0xf0] }
 0x184   :  { %2214 = vmatpush.bf16.msra.mxu2 %v3512_v50  ;;  %v3608_v50 = vor.u32 %v4022_v47, %v3605_v49 }
 0x186   :  { %2176 = vmatpush.bf16.msrb.mxu3 %v3620_v61  ;;  %v3560_v61 = vor.u32 %v4010_v59, %v3557_v60  ;;  %v4062_v60 = vld [vmem:[#allocation13 + $0xe8] sm:$0xff] }
 0x187   :  { %2206 = vmatpush.bf16.msra.mxu1 %v3304_v62  ;;  %v4006_v62 = vld [vmem:[#allocation11 + $0x32c] sm:$0xf] }
 0x188   :  { %2215 = vmatpush.bf16.msra.mxu2 %v3496_v63  ;;  %v3541_v63 = vld [vmem:[#allocation11 + $0x338] sm:$0xf0] }
 0x189   :  { %v3544_v0 = vor.u32 %v4006_v62, %v3541_v63 }
 0x18a   :  { %2177 = vmatpush.bf16.msrb.mxu3 %v3604_v7  ;;  %v4039_v7 = vld [vmem:[#allocation13 + $0x30] sm:$0xff] }
 0x18b   :  { %2207 = vmatpush.bf16.msra.mxu1 %v3288_v53  ;;  %2509 = vmatpush.bf16.msrb.mxu0 %v4039_v7 }
 0x18c   :  { %2216 = vmatpush.bf16.msra.mxu2 %v3480_v8 }
 0x18e   :  { %2178 = vmatpush.bf16.msrb.mxu3 %v3588_v15  ;;  %v4047_v15 = vld [vmem:[#allocation13 + $0x70] sm:$0xff] }
 0x18f   :  { %2208 = vmatpush.bf16.msra.mxu1 %v3272_v16  ;;  %2510 = vmatpush.bf16.msrb.mxu0 %v4038_v10  ;;  %v4059_v10 = vld [vmem:[#allocation13 + $0xd0] sm:$0xff] }
 0x190   :  { %2217 = vmatpush.bf16.msra.mxu2 %v3464_v17 }
 0x191   :  { %2131 = vmatmul.bf16.vlgmr.msra.gmra.mxu3 %v4411_v48 }
 0x192   :  { %2179 = vmatpush.bf16.msrb.mxu3 %v3572_v22  ;;  %2209 = vmatmul.bf16.vlgmr.msra.gmra.mxu1 %v4398_v3  ;;  %v3400_v3 = vor.u32 %v3970_v37, %v3397_v9  ;;  %v4052_v9 = vld [vmem:[#allocation13 + $0x98] sm:$0xff] }
 0x193   :  { %2511 = vmatpush.bf16.msrb.mxu0 %v4037_v11  ;;  %2521 = vmatpush.bf16.msrb.mxu1 %v4048_v14 }
 0x194   :  { %2218 = vmatpush.bf16.msra.mxu2 %v3448_v23 }
 0x196   :  { %2180 = vmatpush.bf16.msrb.mxu3 %v3556_v26  ;;  %v4055_v26 = vld [vmem:[#allocation13 + $0xb0] sm:$0xff] }
 0x197   :  { %2512 = vmatpush.bf16.msrb.mxu0 %v4036_v13  ;;  %2522 = vmatpush.bf16.msrb.mxu1 %v4047_v15 }
 0x198   :  { %2219 = vmatpush.bf16.msra.mxu2 %v3432_v27 }
 0x19a   :  { %2181 = vmatpush.bf16.msrb.mxu3 %v3540_v33  ;;  %v4053_v33 = vld [vmem:[#allocation13 + $0xa0] sm:$0xff] }
 0x19b   :  { %2523 = vmatpush.bf16.msrb.mxu1 %v4046_v19 }
 0x19c   :  { %2220 = vmatpush.bf16.msra.mxu2 %v3416_v34  ;;  %v4432_v34 = vld [vmem:[%s4454_s6] sm:$0xf] }
 0x19d   :  { %v1384_v37 = vperm.slane %v4432_v34, 0  ;;  %v1385_v56 = vperm.slane %v4432_v34, 1  ;;  %v1386_v11 = vperm.slane %v4432_v34, 2 }
 0x19e   :  { %2182 = vmatpush.bf16.msrb.mxu3 %v3524_v41 }
 0x19f   :  { %2524 = vmatpush.bf16.msrb.mxu1 %v4045_v21 }
 0x1a0   :  { %2221 = vmatpush.bf16.msra.mxu2 %v3400_v3 }
 0x1a1   :  { %2183 = vmatmul.bf16.vlgmr.msrb.gmra.mxu3 %v4411_v48 }
 0x1a2   :  { %2227 = vmatpush.bf16.msra.mxu3 %v3640_v42 }
 0x1a3   :  { %2222 = vmatmul.bf16.vlgmr.msra.gmra.mxu2 %v4403_v29  ;;  %v3525_v29 = vld [vmem:[#allocation11 + $0x318] sm:$0xf0]  ;;  %2525 = vmatpush.bf16.msrb.mxu1 %v4044_v40 }
 0x1a4   :  { %v3528_v2 = vor.u32 %v4002_v1, %v3525_v29  ;;  %2534 = vmatpush.bf16.msrb.mxu2 %v4056_v25  ;;  %v4061_v1 = vld [vmem:[#allocation13 + $0xe0] sm:$0xff] }
 0x1a6   :  { %2228 = vmatpush.bf16.msra.mxu3 %v3624_v46 }
 0x1a7   :  { %2526 = vmatpush.bf16.msrb.mxu1 %v4043_v45 }
 0x1a8   :  { %2535 = vmatpush.bf16.msrb.mxu2 %v4055_v26 }
 0x1aa   :  { %2229 = vmatpush.bf16.msra.mxu3 %v3608_v50 }
 0x1ab   :  { %2527 = vmatpush.bf16.msrb.mxu1 %v4042_v30 }
 0x1ac   :  { %2536 = vmatpush.bf16.msrb.mxu2 %v4054_v31 }
 0x1ae   :  { %2230 = vmatpush.bf16.msra.mxu3 %v3592_v54 }
 0x1af   :  { %2528 = vmatpush.bf16.msrb.mxu1 %v4041_v32 }
 0x1b0   :  { %2537 = vmatpush.bf16.msrb.mxu2 %v4053_v33 }
 0x1b2   :  { %2231 = vmatpush.bf16.msra.mxu3 %v3576_v57  ;;  %v4063_v57 = vld [vmem:[#allocation13 + $0xf0] sm:$0xff] }
 0x1b4   :  { %2538 = vmatpush.bf16.msrb.mxu2 %v4052_v9 }
 0x1b6   :  { %2232 = vmatpush.bf16.msra.mxu3 %v3560_v61 }
 0x1b8   :  { %2539 = vmatpush.bf16.msrb.mxu2 %v4051_v38 }
 0x1ba   :  { %2233 = vmatpush.bf16.msra.mxu3 %v3544_v0 }
 0x1bc   :  { %2540 = vmatpush.bf16.msrb.mxu2 %v4050_v44 }
 0x1be   :  { %2234 = vmatpush.bf16.msra.mxu3 %v3528_v2  ;;  %v2041_v4 = vpop.f32.mrf.mxu0 }
 0x1bf   :  { %v2042_v41 = vadd.f32 %v2041_v4, %v1384_v37  ;;  %v4077_v37 = vld [vmem:[%s4456_s8] ss:$0 sm:$0xff] }
 0x1c0   :  { %2541 = vmatpush.bf16.msrb.mxu2 %v4049_v51 }
 0x1c1   :  { %2235 = vmatmul.bf16.vlgmr.msra.gmra.mxu3 %v4411_v48  ;;  %v4035_v48 = vld [vmem:[#allocation13 + $0x10] sm:$0xff] }
 0x1c2   :  { %2513 = vmatpush.bf16.msrb.mxu0 %v4035_v48  ;;  %2547 = vmatpush.bf16.msrb.mxu3 %v4064_v52  ;;  %v4057_v48 = vld [vmem:[#allocation13 + $0xc0] sm:$0xff] }
 0x1c6   :  { %v2043_v5 = vpop.f32.mrf.mxu0  ;;  %2514 = vmatpush.bf16.msrb.mxu0 %v4034_v18  ;;  %2548 = vmatpush.bf16.msrb.mxu3 %v4063_v57 }
 0x1c7   :  { %v4060_v5 = vld [vmem:[#allocation13 + $0xd8] sm:$0xff] }
 0x1ca   :  { %2515 = vmatpush.bf16.msrb.mxu0 %v4033_v20  ;;  %2549 = vmatpush.bf16.msrb.mxu3 %v4062_v60 }
 0x1ce   :  { %v2054_v53 = vpop.f32.mrf.mxu1  ;;  %v4421_v8 = vpop.f32.mrf.mxu0  ;;  %2550 = vmatpush.bf16.msrb.mxu3 %v4061_v1 }
 0x1cf   :  { %v2055_v42 = vadd.f32 %v2054_v53, %v2042_v41  ;;  %v2094_v61 = vadd.f32 %v4421_v8, %v1385_v56 }
 0x1d2   :  { %2551 = vmatpush.bf16.msrb.mxu3 %v4060_v5 }
 0x1d6   :  { %v2056_v12 = vpop.f32.mrf.mxu1  ;;  %v2095_v58 = vpop.f32.mrf.mxu0  ;;  %2552 = vmatpush.bf16.msrb.mxu3 %v4059_v10 }
 0x1d7   :  { %v4058_v58 = vld [vmem:[#allocation13 + $0xc8] sm:$0xff] }
 0x1da   :  { %2553 = vmatpush.bf16.msrb.mxu3 %v4058_v58 }
 0x1de   :  { %v4423_v16 = vpop.f32.mrf.mxu1  ;;  %v4425_v17 = vpop.f32.mrf.mxu0  ;;  %2554 = vmatpush.bf16.msrb.mxu3 %v4057_v48 }
 0x1df   :  { %v2107_v0 = vadd.f32 %v4423_v16, %v2094_v61  ;;  %v2146_v12 = vadd.f32 %v4425_v17, %v1386_v11 }
 0x1e5   :  { %v2067_v22 = vpop.f32.mrf.mxu2 }
 0x1e6   :  { %v2108_v23 = vpop.f32.mrf.mxu1  ;;  %v2147_v24 = vpop.f32.mrf.mxu0  ;;  %v2068_v43 = vadd.f32 %v2067_v22, %v2055_v42 }
 0x1e7   :  { %v1387_v23 = vperm.slane %v4432_v34, 3 }
 0x1ed   :  { %v2069_v27 = vpop.f32.mrf.mxu2 }
 0x1ef   :  { %v4427_v28 = vpop.f32.mrf.mxu1 }
 0x1f0   :  { %v2159_v13 = vadd.f32 %v4427_v28, %v2146_v12 }
 0x1f6   :  { %v2119_v35 = vpop.f32.mrf.mxu2 }
 0x1f7   :  { %v2160_v36 = vpop.f32.mrf.mxu1  ;;  %v2120_v29 = vadd.f32 %v2119_v35, %v2107_v0 }
 0x1fe   :  { %v2197_v39 = vpop.f32.mrf.mxu0  ;;  %v2121_v3 = vpop.f32.mrf.mxu2 }
 0x1ff   :  { %v2198_v24 = vadd.f32 %v2197_v39, %v1387_v23 }
 0x204   :  { %v2080_v46 = vpop.f32.mrf.mxu3 }
 0x205   :  { %v2081_v47 = vadd.f32 %v2080_v46, %v2068_v43 }
 0x206   :  { %v2199_v49 = vpop.f32.mrf.mxu0  ;;  %v2171_v54 = vpop.f32.mrf.mxu2 }
 0x207   :  { %v2240_v50 = vmax.f32 %v2081_v47, 0.0  ;;  %v2172_v14 = vadd.f32 %v2171_v54, %v2159_v13 }
 0x209   :  { %v2244_v55 = vpack.c.bf16 %v2240_v50, %v2240_v50 }
 0x20b   :  { %2516 = vmatmul.bf16.vlgmr.msrb.gmra.mxu0 %v2244_v55 }
 0x20c   :  { %v2082_v59 = vpop.f32.mrf.mxu3 }
 0x20e   :  { %v2173_v63 = vpop.f32.mrf.mxu2 }
 0x20f   :  { %v2210_v62 = vpop.f32.mrf.mxu1 }
 0x210   :  { %v2211_v40 = vadd.f32 %v2210_v62, %v2198_v24 }
 0x214   :  { %v2132_v2 = vpop.f32.mrf.mxu3 }
 0x215   :  { %v2133_v4 = vadd.f32 %v2132_v2, %v2120_v29 }
 0x217   :  { %v2241_v6 = vmax.f32 %v2133_v4, 0.0  ;;  %v2212_v7 = vpop.f32.mrf.mxu1 }
 0x219   :  { %v2245_v53 = vpack.c.bf16 %v2241_v6, %v2241_v6 }
 0x21b   :  { %2529 = vmatmul.bf16.vlgmr.msrb.gmra.mxu1 %v2245_v53 }
 0x21c   :  { %v2134_v8 = vpop.f32.mrf.mxu3 }
 0x224   :  { %v2184_v15 = vpop.f32.mrf.mxu3 }
 0x225   :  { %v2185_v16 = vadd.f32 %v2184_v15, %v2172_v14 }
 0x226   :  { %v2223_v18 = vpop.f32.mrf.mxu2 }
 0x227   :  { %v2242_v19 = vmax.f32 %v2185_v16, 0.0  ;;  %v2224_v17 = vadd.f32 %v2223_v18, %v2211_v40 }
 0x229   :  { %v2246_v20 = vpack.c.bf16 %v2242_v19, %v2242_v19 }
 0x22b   :  { %2542 = vmatmul.bf16.vlgmr.msrb.gmra.mxu2 %v2246_v20 }
 0x22c   :  { %v2186_v21 = vpop.f32.mrf.mxu3 }
 0x22e   :  { %v2225_v22 = vpop.f32.mrf.mxu2 }
 0x244   :  { %v2236_v25 = vpop.f32.mrf.mxu3 }
 0x245   :  { %v2237_v45 = vadd.f32 %v2236_v25, %v2224_v17 }
 0x247   :  { %v2243_v26 = vmax.f32 %v2237_v45, 0.0 }
 0x249   :  { %v2247_v27 = vpack.c.bf16 %v2243_v26, %v2243_v26 }
 0x24b   :  { %2555 = vmatmul.bf16.vlgmr.msrb.gmra.mxu3 %v2247_v27 }
 0x24c   :  { %v2238_v28 = vpop.f32.mrf.mxu3 }
 0x288   :  { %v2517_v30 = vpop.f32.mrf.mxu0 }
 0x289   :  { %v2518_v34 = vadd.f32 %v4077_v37, %v2517_v30 }
 0x290   :  { %v2519_v31 = vpop.f32.mrf.mxu0 }
 0x298   :  { %v2530_v32 = vpop.f32.mrf.mxu1 }
 0x299   :  { %v2531_v9 = vadd.f32 %v2530_v32, %v2518_v34 }
 0x2a0   :  { %v2532_v33 = vpop.f32.mrf.mxu1 }
 0x2ae   :  { %v2543_v35 = vpop.f32.mrf.mxu2 }
 0x2af   :  { %v2544_v38 = vadd.f32 %v2543_v35, %v2531_v9 }
 0x2b6   :  { %v2545_v36 = vpop.f32.mrf.mxu2 }
 0x2ce   :  { %v2556_v39 = vpop.f32.mrf.mxu3 }
 0x2cf   :  { %v2557_v41 = vadd.f32 %v2556_v39, %v2544_v38 }
 0x2d1   :  { %2560 = vst [vmem:[#allocation14] sm:$0xff] %v2557_v41 }
 0x2d2   :  { %2571 = dma.vmem_to_hbm [thread:$0]  %s2567_s1, 128, %s2569_s26, [#allocation4]  }
 0x2d6   :  { %v2558_v3 = vpop.f32.mrf.mxu3 }
 0x2d7   :  { %4278 = dma.done.wait [#allocation4], 128  }
 0x2d8   :  { %4279 = vsyncadd [#allocation4], 4294967168 }
 0x2d9   :  { %2576 = vsyncpa [#allocation3], 1 }
 0x2da   :  { %2577 = vsyncpa [#allocation6], 1 }
 0x2db   :  { %2578 = vsyncpa [#allocation9], 1 }
 0x2dc   :  { %2579 = vsyncpa [#allocation12], 1 }
 0x2dd   :  { %2580 = vsyncpa [#allocation4], 1 }

</bundles_post_ra>
